<compile_context>
chip_gen: v5e
topology: v5e:2x2
jax: 0.10.0
libtpu: 0.0.40
codegen_flags: <defaults>
</compile_context>

<pallas_src>
import functools

import jax
import jax.numpy as jnp
from jax import lax
from jax.experimental import pallas as pl
from jax.experimental.pallas import tpu as pltpu

# ---- scaled-down hyperparameters (same structure as the PyTorch module) ----
VOCAB = 64          # size = len(chars)
N_EMBD = 32         # n_embd
BLOCK_SIZE = 8      # block_size (== T here)
NUM_HEADS = 4       # num_heads
HEAD_SIZE = N_EMBD // NUM_HEADS
N_LAYER = 2         # n_layer
FFN = 4 * N_EMBD
VPAD = 128          # lm_head output padded to a full lane width


def _layernorm(x, g, b, eps=1e-5):
    mu = jnp.mean(x, axis=-1, keepdims=True)
    var = jnp.mean((x - mu) ** 2, axis=-1, keepdims=True)
    return (x - mu) * lax.rsqrt(var + eps) * g + b


# ------------------------------ fused kernel -------------------------------

def fused_lm_kernel(idx_ref, tok_ref, pos_ref, wqkv_ref, wp_ref, w1_ref,
                    w2_ref, vec_ref, b1_ref, lnf_ref, wlm_ref, blm_ref,
                    out_ref, *, n_layer, n_heads, head_size, seq_len):
    """Whole LanguageModel forward for the flattened (B*T, D) activation."""
    f32 = jnp.float32
    d_model = n_heads * head_size
    bt = idx_ref.shape[0]
    vocab = tok_ref.shape[0]

    # --- token embedding gather as a one-hot matmul + position embedding ---
    ids = idx_ref[...]                                            # (BT, 1) i32
    onehot = (ids == lax.broadcasted_iota(jnp.int32, (bt, vocab), 1)
              ).astype(f32)                                       # (BT, V)
    x = jnp.dot(onehot, tok_ref[...], preferred_element_type=f32) + pos_ref[...]

    # --- causal + same-batch additive bias, generated in-kernel -----------
    row = lax.broadcasted_iota(jnp.int32, (bt, bt), 0)
    col = lax.broadcasted_iota(jnp.int32, (bt, bt), 1)
    if (seq_len & (seq_len - 1)) == 0:        # power-of-two T: use shifts
        shift = seq_len.bit_length() - 1
        rb = lax.shift_right_logical(row, shift)
        cb = lax.shift_right_logical(col, shift)
    else:
        rb = row // seq_len
        cb = col // seq_len
    keep = jnp.logical_and(rb == cb, col <= row)
    bias2d = jnp.where(keep, 0.0, -1e30).astype(f32)              # (BT, BT)
    bias = jnp.broadcast_to(bias2d, (n_heads, bt, bt))            # hoisted

    for li in range(n_layer):                                     # static unroll
        lv = vec_ref[li]                                          # (6, D)
        ln1_g, ln1_b = lv[0:1], lv[1:2]
        ln2_g, ln2_b = lv[2:3], lv[3:4]
        bp, b2 = lv[4:5], lv[5:6]

        # ---------------- multi-head causal self-attention ----------------
        h = _layernorm(x, ln1_g, ln1_b)                           # (BT, D)
        # one lane-dense QKV matmul; softmax scale pre-folded into Wq columns
        qkv = jnp.dot(h, wqkv_ref[li], preferred_element_type=f32)  # (BT, 3D)
        q = jnp.stack([qkv[:, hh * head_size:(hh + 1) * head_size]
                       for hh in range(n_heads)])                 # (H, BT, hs)
        k = jnp.stack([qkv[:, d_model + hh * head_size:
                           d_model + (hh + 1) * head_size]
                       for hh in range(n_heads)])
        v = jnp.stack([qkv[:, 2 * d_model + hh * head_size:
                           2 * d_model + (hh + 1) * head_size]
                       for hh in range(n_heads)])

        s = jnp.einsum('hqd,hkd->hqk', q, k,
                       preferred_element_type=f32) + bias          # (H,BT,BT)
        m = jnp.max(s, axis=-1, keepdims=True)
        e = jnp.exp(s - m)
        p = e / jnp.sum(e, axis=-1, keepdims=True)                 # exact softmax

        o = jnp.einsum('hqk,hkd->hqd', p, v,
                       preferred_element_type=f32)                 # (H, BT, hs)
        o_packed = jnp.concatenate([o[hh] for hh in range(n_heads)],
                                   axis=-1)                        # (BT, D)
        attn = jnp.dot(o_packed, wp_ref[li],
                       preferred_element_type=f32) + bp
        x = x + attn                                               # residual

        # ---------------------------- feed-forward -------------------------
        h2 = _layernorm(x, ln2_g, ln2_b)
        ff = jnp.dot(h2, w1_ref[li], preferred_element_type=f32) + b1_ref[li]
        ff = jnp.maximum(ff, 0.0)                                  # ReLU
        x = x + jnp.dot(ff, w2_ref[li], preferred_element_type=f32) + b2

    # --------------------------- final LN + lm_head ------------------------
    lnf = lnf_ref[...]
    hf = _layernorm(x, lnf[0:1], lnf[1:2])
    out_ref[...] = (jnp.dot(hf, wlm_ref[...], preferred_element_type=f32)
                    + blm_ref[...])                                # (BT, 128)


# ------------------------------ Python wrapper ------------------------------

def prepare_params(params, batch, seq_len):
    """ONE-TIME restructuring of PyTorch-layout params into kernel layout."""
    scale = HEAD_SIZE ** -0.5
    blocks = params["blocks"]
    wqkv = jnp.stack([jnp.concatenate(
        [blk["wq"] * scale, blk["wk"], blk["wv"]], axis=1)
        for blk in blocks])                                        # (L, D, 3D)
    wp = jnp.stack([blk["wp"] for blk in blocks])                  # (L, D, D)
    w1 = jnp.stack([blk["w1"] for blk in blocks])                  # (L, D, FFN)
    w2 = jnp.stack([blk["w2"] for blk in blocks])                  # (L, FFN, D)
    vecs = jnp.stack([jnp.concatenate(
        [blk["ln1_g"], blk["ln1_b"], blk["ln2_g"], blk["ln2_b"],
         blk["bp"], blk["b2"]], axis=0) for blk in blocks])        # (L, 6, D)
    b1s = jnp.stack([blk["b1"] for blk in blocks])                 # (L, 1, FFN)
    lnf = jnp.concatenate([params["lnf_g"], params["lnf_b"]], axis=0)  # (2, D)
    # lane-dense lm_head: pad VOCAB -> 128 output lanes
    w_lm = jnp.pad(params["w_lm"], ((0, 0), (0, VPAD - VOCAB)))
    b_lm = jnp.pad(params["b_lm"], ((0, 0), (0, VPAD - VOCAB)))
    pos = jnp.tile(params["pos_emb"][:seq_len], (batch, 1))        # (BT, D)
    return dict(tok=params["tok_emb"], pos=pos, wqkv=wqkv, wp=wp, w1=w1,
                w2=w2, vecs=vecs, b1s=b1s, lnf=lnf, wlm=w_lm, blm=b_lm)


@jax.jit
def language_model_forward(idx, kparams):
    """idx: int32 [B, T].  Returns logits [B, T, VOCAB] (targets=None path)."""
    B, T = idx.shape
    BT = B * T
    idx2 = idx.reshape(BT, 1).astype(jnp.int32)
    kernel = functools.partial(
        fused_lm_kernel,
        n_layer=kparams["wqkv"].shape[0],
        n_heads=NUM_HEADS, head_size=HEAD_SIZE, seq_len=T)
    logits_padded = pl.pallas_call(
        kernel,
        out_shape=jax.ShapeDtypeStruct((BT, VPAD), jnp.float32),
        compiler_params=pltpu.CompilerParams(vmem_limit_bytes=32 * 1024 * 1024),
    )(idx2, kparams["tok"], kparams["pos"], kparams["wqkv"], kparams["wp"],
      kparams["w1"], kparams["w2"], kparams["vecs"], kparams["b1s"],
      kparams["lnf"], kparams["wlm"], kparams["blm"])
    return logits_padded[:, :VOCAB].reshape(B, T, VOCAB)
    # TODO(synk): cross_entropy loss path (targets is not None) and the
    # sampling `generate` loop are not implemented (inference logits only).


# --------------------------- deterministic params ---------------------------

def init_params(key):
    def nrm(k, shape, scale=0.05):
        return scale * jax.random.normal(k, shape, dtype=jnp.float32)

    keys = jax.random.split(key, 4 + N_LAYER)
    params = {
        "tok_emb": nrm(keys[0], (VOCAB, N_EMBD), 0.1),
        "pos_emb": nrm(keys[1], (BLOCK_SIZE, N_EMBD), 0.1),
        "lnf_g": jnp.ones((1, N_EMBD), jnp.float32),
        "lnf_b": jnp.zeros((1, N_EMBD), jnp.float32),
        "w_lm": nrm(keys[2], (N_EMBD, VOCAB)),
        "b_lm": nrm(keys[3], (1, VOCAB)),
        "blocks": [],
    }
    for li in range(N_LAYER):
        ks = jax.random.split(keys[4 + li], 10)
        params["blocks"].append({
            "ln1_g": jnp.ones((1, N_EMBD), jnp.float32),
            "ln1_b": jnp.zeros((1, N_EMBD), jnp.float32),
            "wq": nrm(ks[0], (N_EMBD, N_EMBD)),
            "wk": nrm(ks[1], (N_EMBD, N_EMBD)),
            "wv": nrm(ks[2], (N_EMBD, N_EMBD)),
            "wp": nrm(ks[3], (N_EMBD, N_EMBD)),
            "bp": nrm(ks[4], (1, N_EMBD)),
            "ln2_g": jnp.ones((1, N_EMBD), jnp.float32),
            "ln2_b": jnp.zeros((1, N_EMBD), jnp.float32),
            "w1": nrm(ks[5], (N_EMBD, FFN)),
            "b1": nrm(ks[6], (1, FFN)),
            "w2": nrm(ks[7], (FFN, N_EMBD)),
            "b2": nrm(ks[8], (1, N_EMBD)),
        })
    return params


# ---------------------------- pure-JAX reference ----------------------------

def reference_forward(idx, params):
    B, T = idx.shape
    x = params["tok_emb"][idx] + params["pos_emb"][:T][None, :, :]
    causal = jnp.tril(jnp.ones((T, T), bool))
    for p in params["blocks"]:
        h = _layernorm(x, p["ln1_g"][0], p["ln1_b"][0])
        q = h @ p["wq"]
        k = h @ p["wk"]
        v = h @ p["wv"]
        qh = q.reshape(B, T, NUM_HEADS, HEAD_SIZE).transpose(0, 2, 1, 3)
        kh = k.reshape(B, T, NUM_HEADS, HEAD_SIZE).transpose(0, 2, 1, 3)
        vh = v.reshape(B, T, NUM_HEADS, HEAD_SIZE).transpose(0, 2, 1, 3)
        s = jnp.einsum("bhqd,bhkd->bhqk", qh, kh) * (HEAD_SIZE ** -0.5)
        s = jnp.where(causal[None, None], s, -jnp.inf)
        w = jax.nn.softmax(s, axis=-1)
        o = jnp.einsum("bhqk,bhkd->bhqd", w, vh)
        o = o.transpose(0, 2, 1, 3).reshape(B, T, N_EMBD)
        x = x + (o @ p["wp"] + p["bp"][0])
        h2 = _layernorm(x, p["ln2_g"][0], p["ln2_b"][0])
        ff = jnp.maximum(h2 @ p["w1"] + p["b1"][0], 0.0)
        x = x + (ff @ p["w2"] + p["b2"][0])
    x = _layernorm(x, params["lnf_g"][0], params["lnf_b"][0])
    return x @ params["w_lm"] + params["b_lm"][0]


if __name__ == "__main__":
    key = jax.random.PRNGKey(0)
    k_idx, k_param = jax.random.split(key)
    B, T = 2, BLOCK_SIZE
    idx = jax.random.randint(k_idx, (B, T), 0, VOCAB, dtype=jnp.int32)
    params = init_params(k_param)

    # one-time restructuring into kernel layout (hoisted out of the forward)
    kparams = prepare_params(params, B, T)

    logits = language_model_forward(idx, kparams)
    logits = jax.block_until_ready(logits)

    ref = reference_forward(idx, params)
    assert logits.shape == (B, T, VOCAB)
    assert bool(jnp.allclose(logits, ref, atol=1e-3, rtol=1e-3))
    print("KERNEL_OK")
</pallas_src>

<mosaic_0001>
module attributes {stable_mosaic.version = 11 : i64} {
  func.func @fused_lm_kernel(%arg0: memref<16x1xi32, #tpu.memory_space<vmem>>, %arg1: memref<64x32xf32, #tpu.memory_space<vmem>>, %arg2: memref<16x32xf32, #tpu.memory_space<vmem>>, %arg3: memref<2x32x96xf32, #tpu.memory_space<vmem>>, %arg4: memref<2x32x32xf32, #tpu.memory_space<vmem>>, %arg5: memref<2x32x128xf32, #tpu.memory_space<vmem>>, %arg6: memref<2x128x32xf32, #tpu.memory_space<vmem>>, %arg7: memref<2x6x32xf32, #tpu.memory_space<vmem>>, %arg8: memref<2x1x128xf32, #tpu.memory_space<vmem>>, %arg9: memref<2x32xf32, #tpu.memory_space<vmem>>, %arg10: memref<32x128xf32, #tpu.memory_space<vmem>>, %arg11: memref<1x128xf32, #tpu.memory_space<vmem>>, %arg12: memref<16x128xf32, #tpu.memory_space<vmem>>) attributes {dimension_semantics = [], scalar_prefetch = 0 : i64, scratch_operands = 0 : i64, tpu.core_type = #tpu.core_type<tc>} {
    %c0 = arith.constant 0 : index
    %c0_0 = arith.constant 0 : index
    %0 = vector.load %arg0[%c0, %c0_0] : memref<16x1xi32, #tpu.memory_space<vmem>>, vector<16x1xi32>
    %1 = tpu.iota {dimensions = array<i32: 1>} : vector<16x64xi32>
    %2 = vector.broadcast %0 : vector<16x1xi32> to vector<16x64xi32>
    %3 = arith.cmpi eq, %2, %1 : vector<16x64xi32>
    %4 = arith.extui %3 : vector<16x64xi1> to vector<16x64xi32>
    %5 = arith.sitofp %4 : vector<16x64xi32> to vector<16x64xf32>
    %c0_1 = arith.constant 0 : index
    %c0_2 = arith.constant 0 : index
    %6 = vector.load %arg1[%c0_1, %c0_2] : memref<64x32xf32, #tpu.memory_space<vmem>>, vector<64x32xf32>
    %cst = arith.constant dense<0.000000e+00> : vector<16x32xf32>
    %7 = tpu.matmul %5, %6, %cst {dimension_numbers = #tpu.dot_dimension_numbers<[1], [0], [0], [1], [0, 0, 1, 1], [], []>} : vector<16x64xf32>, vector<64x32xf32>, vector<16x32xf32> -> vector<16x32xf32>
    %c0_3 = arith.constant 0 : index
    %c0_4 = arith.constant 0 : index
    %8 = vector.load %arg2[%c0_3, %c0_4] : memref<16x32xf32, #tpu.memory_space<vmem>>, vector<16x32xf32>
    %9 = arith.addf %7, %8 : vector<16x32xf32>
    %10 = tpu.iota {dimensions = array<i32: 0>} : vector<16x16xi32>
    %11 = tpu.iota {dimensions = array<i32: 1>} : vector<16x16xi32>
    %c3_i32 = arith.constant 3 : i32
    %12 = vector.broadcast %c3_i32 : i32 to vector<16x16xi32>
    %13 = arith.shrui %10, %12 : vector<16x16xi32>
    %c3_i32_5 = arith.constant 3 : i32
    %14 = vector.broadcast %c3_i32_5 : i32 to vector<16x16xi32>
    %15 = arith.shrui %11, %14 : vector<16x16xi32>
    %16 = arith.cmpi eq, %13, %15 : vector<16x16xi32>
    %17 = arith.cmpi sle, %11, %10 : vector<16x16xi32>
    %18 = arith.andi %16, %17 : vector<16x16xi1>
    %cst_6 = arith.constant 0.000000e+00 : f32
    %cst_7 = arith.constant -1.000000e+30 : f32
    %19 = vector.broadcast %cst_6 : f32 to vector<16x16xf32>
    %20 = vector.broadcast %cst_7 : f32 to vector<16x16xf32>
    %21 = arith.select %18, %19, %20 : vector<16x16xi1>, vector<16x16xf32>
    %22 = vector.shape_cast %21 : vector<16x16xf32> to vector<1x16x16xf32>
    %23 = vector.broadcast %22 : vector<1x16x16xf32> to vector<4x16x16xf32>
    %c0_8 = arith.constant 0 : index
    %c0_9 = arith.constant 0 : index
    %c0_10 = arith.constant 0 : index
    %24 = vector.load %arg7[%c0_8, %c0_9, %c0_10] : memref<2x6x32xf32, #tpu.memory_space<vmem>>, vector<1x6x32xf32>
    %25 = vector.shape_cast %24 : vector<1x6x32xf32> to vector<6x32xf32>
    %26 = vector.extract_strided_slice %25 {offsets = [0, 0], sizes = [1, 32], strides = [1, 1]} : vector<6x32xf32> to vector<1x32xf32>
    %27 = vector.extract_strided_slice %25 {offsets = [1, 0], sizes = [1, 32], strides = [1, 1]} : vector<6x32xf32> to vector<1x32xf32>
    %28 = vector.extract_strided_slice %25 {offsets = [2, 0], sizes = [1, 32], strides = [1, 1]} : vector<6x32xf32> to vector<1x32xf32>
    %29 = vector.extract_strided_slice %25 {offsets = [3, 0], sizes = [1, 32], strides = [1, 1]} : vector<6x32xf32> to vector<1x32xf32>
    %30 = vector.extract_strided_slice %25 {offsets = [4, 0], sizes = [1, 32], strides = [1, 1]} : vector<6x32xf32> to vector<1x32xf32>
    %31 = vector.extract_strided_slice %25 {offsets = [5, 0], sizes = [1, 32], strides = [1, 1]} : vector<6x32xf32> to vector<1x32xf32>
    %cst_11 = arith.constant dense<0.000000e+00> : vector<16xf32>
    %32 = vector.multi_reduction <add>, %9, %cst_11 [1] : vector<16x32xf32> to vector<16xf32>
    %33 = vector.shape_cast %32 : vector<16xf32> to vector<16x1xf32>
    %cst_12 = arith.constant 3.200000e+01 : f32
    %34 = vector.broadcast %cst_12 : f32 to vector<16x1xf32>
    %35 = arith.divf %33, %34 : vector<16x1xf32>
    %36 = vector.broadcast %35 : vector<16x1xf32> to vector<16x32xf32>
    %37 = arith.subf %9, %36 : vector<16x32xf32>
    %38 = arith.mulf %37, %37 : vector<16x32xf32>
    %cst_13 = arith.constant dense<0.000000e+00> : vector<16xf32>
    %39 = vector.multi_reduction <add>, %38, %cst_13 [1] : vector<16x32xf32> to vector<16xf32>
    %40 = vector.shape_cast %39 : vector<16xf32> to vector<16x1xf32>
    %cst_14 = arith.constant 3.200000e+01 : f32
    %41 = vector.broadcast %cst_14 : f32 to vector<16x1xf32>
    %42 = arith.divf %40, %41 : vector<16x1xf32>
    %43 = vector.broadcast %35 : vector<16x1xf32> to vector<16x32xf32>
    %44 = arith.subf %9, %43 : vector<16x32xf32>
    %cst_15 = arith.constant 9.99999974E-6 : f32
    %45 = vector.broadcast %cst_15 : f32 to vector<16x1xf32>
    %46 = arith.addf %42, %45 : vector<16x1xf32>
    %47 = math.rsqrt %46 : vector<16x1xf32>
    %48 = vector.broadcast %47 : vector<16x1xf32> to vector<16x32xf32>
    %49 = arith.mulf %44, %48 : vector<16x32xf32>
    %50 = vector.broadcast %26 : vector<1x32xf32> to vector<16x32xf32>
    %51 = arith.mulf %49, %50 : vector<16x32xf32>
    %52 = vector.broadcast %27 : vector<1x32xf32> to vector<16x32xf32>
    %53 = arith.addf %51, %52 : vector<16x32xf32>
    %c0_16 = arith.constant 0 : index
    %c0_17 = arith.constant 0 : index
    %c0_18 = arith.constant 0 : index
    %54 = vector.load %arg3[%c0_16, %c0_17, %c0_18] : memref<2x32x96xf32, #tpu.memory_space<vmem>>, vector<1x32x96xf32>
    %55 = vector.shape_cast %54 : vector<1x32x96xf32> to vector<32x96xf32>
    %cst_19 = arith.constant dense<0.000000e+00> : vector<16x96xf32>
    %56 = tpu.matmul %53, %55, %cst_19 {dimension_numbers = #tpu.dot_dimension_numbers<[1], [0], [0], [1], [0, 0, 1, 1], [], []>} : vector<16x32xf32>, vector<32x96xf32>, vector<16x96xf32> -> vector<16x96xf32>
    %57 = vector.extract_strided_slice %56 {offsets = [0, 0], sizes = [16, 8], strides = [1, 1]} : vector<16x96xf32> to vector<16x8xf32>
    %58 = vector.extract_strided_slice %56 {offsets = [0, 8], sizes = [16, 8], strides = [1, 1]} : vector<16x96xf32> to vector<16x8xf32>
    %59 = vector.extract_strided_slice %56 {offsets = [0, 16], sizes = [16, 8], strides = [1, 1]} : vector<16x96xf32> to vector<16x8xf32>
    %60 = vector.extract_strided_slice %56 {offsets = [0, 24], sizes = [16, 8], strides = [1, 1]} : vector<16x96xf32> to vector<16x8xf32>
    %61 = vector.shape_cast %57 : vector<16x8xf32> to vector<1x16x8xf32>
    %62 = vector.shape_cast %58 : vector<16x8xf32> to vector<1x16x8xf32>
    %63 = vector.shape_cast %59 : vector<16x8xf32> to vector<1x16x8xf32>
    %64 = vector.shape_cast %60 : vector<16x8xf32> to vector<1x16x8xf32>
    %65 = tpu.concatenate %61, %62, %63, %64 in 0 : vector<1x16x8xf32>, vector<1x16x8xf32>, vector<1x16x8xf32>, vector<1x16x8xf32> -> vector<4x16x8xf32>
    %66 = vector.extract_strided_slice %56 {offsets = [0, 32], sizes = [16, 8], strides = [1, 1]} : vector<16x96xf32> to vector<16x8xf32>
    %67 = vector.extract_strided_slice %56 {offsets = [0, 40], sizes = [16, 8], strides = [1, 1]} : vector<16x96xf32> to vector<16x8xf32>
    %68 = vector.extract_strided_slice %56 {offsets = [0, 48], sizes = [16, 8], strides = [1, 1]} : vector<16x96xf32> to vector<16x8xf32>
    %69 = vector.extract_strided_slice %56 {offsets = [0, 56], sizes = [16, 8], strides = [1, 1]} : vector<16x96xf32> to vector<16x8xf32>
    %70 = vector.shape_cast %66 : vector<16x8xf32> to vector<1x16x8xf32>
    %71 = vector.shape_cast %67 : vector<16x8xf32> to vector<1x16x8xf32>
    %72 = vector.shape_cast %68 : vector<16x8xf32> to vector<1x16x8xf32>
    %73 = vector.shape_cast %69 : vector<16x8xf32> to vector<1x16x8xf32>
    %74 = tpu.concatenate %70, %71, %72, %73 in 0 : vector<1x16x8xf32>, vector<1x16x8xf32>, vector<1x16x8xf32>, vector<1x16x8xf32> -> vector<4x16x8xf32>
    %75 = vector.extract_strided_slice %56 {offsets = [0, 64], sizes = [16, 8], strides = [1, 1]} : vector<16x96xf32> to vector<16x8xf32>
    %76 = vector.extract_strided_slice %56 {offsets = [0, 72], sizes = [16, 8], strides = [1, 1]} : vector<16x96xf32> to vector<16x8xf32>
    %77 = vector.extract_strided_slice %56 {offsets = [0, 80], sizes = [16, 8], strides = [1, 1]} : vector<16x96xf32> to vector<16x8xf32>
    %78 = vector.extract_strided_slice %56 {offsets = [0, 88], sizes = [16, 8], strides = [1, 1]} : vector<16x96xf32> to vector<16x8xf32>
    %79 = vector.shape_cast %75 : vector<16x8xf32> to vector<1x16x8xf32>
    %80 = vector.shape_cast %76 : vector<16x8xf32> to vector<1x16x8xf32>
    %81 = vector.shape_cast %77 : vector<16x8xf32> to vector<1x16x8xf32>
    %82 = vector.shape_cast %78 : vector<16x8xf32> to vector<1x16x8xf32>
    %83 = tpu.concatenate %79, %80, %81, %82 in 0 : vector<1x16x8xf32>, vector<1x16x8xf32>, vector<1x16x8xf32>, vector<1x16x8xf32> -> vector<4x16x8xf32>
    "tpu.trace_start"() <{level = 10 : i32, message = "hqd,hkd->hqk"}> : () -> ()
    %cst_20 = arith.constant dense<0.000000e+00> : vector<4x16x16xf32>
    %84 = tpu.matmul %65, %74, %cst_20 {dimension_numbers = #tpu.dot_dimension_numbers<[2], [2], [1], [1], [0, 0, 0, 1, 1, 1], [0], [0]>} : vector<4x16x8xf32>, vector<4x16x8xf32>, vector<4x16x16xf32> -> vector<4x16x16xf32>
    "tpu.trace_stop"() : () -> ()
    %85 = arith.addf %84, %23 : vector<4x16x16xf32>
    %cst_21 = arith.constant dense<0xFF800000> : vector<4x16xf32>
    %86 = vector.multi_reduction <maximumf>, %85, %cst_21 [2] : vector<4x16x16xf32> to vector<4x16xf32>
    %87 = vector.shape_cast %86 : vector<4x16xf32> to vector<4x16x1xf32>
    %88 = vector.broadcast %87 : vector<4x16x1xf32> to vector<4x16x16xf32>
    %89 = arith.subf %85, %88 : vector<4x16x16xf32>
    %90 = math.exp %89 : vector<4x16x16xf32>
    %cst_22 = arith.constant dense<0.000000e+00> : vector<4x16xf32>
    %91 = vector.multi_reduction <add>, %90, %cst_22 [2] : vector<4x16x16xf32> to vector<4x16xf32>
    %92 = vector.shape_cast %91 : vector<4x16xf32> to vector<4x16x1xf32>
    %93 = vector.broadcast %92 : vector<4x16x1xf32> to vector<4x16x16xf32>
    %94 = arith.divf %90, %93 : vector<4x16x16xf32>
    "tpu.trace_start"() <{level = 10 : i32, message = "hqk,hkd->hqd"}> : () -> ()
    %cst_23 = arith.constant dense<0.000000e+00> : vector<4x16x8xf32>
    %95 = tpu.matmul %94, %83, %cst_23 {dimension_numbers = #tpu.dot_dimension_numbers<[2], [1], [1], [2], [0, 0, 0, 1, 1, 2], [0], [0]>} : vector<4x16x16xf32>, vector<4x16x8xf32>, vector<4x16x8xf32> -> vector<4x16x8xf32>
    "tpu.trace_stop"() : () -> ()
    %96 = vector.extract_strided_slice %95 {offsets = [0, 0, 0], sizes = [1, 16, 8], strides = [1, 1, 1]} : vector<4x16x8xf32> to vector<1x16x8xf32>
    %97 = vector.shape_cast %96 : vector<1x16x8xf32> to vector<16x8xf32>
    %98 = vector.extract_strided_slice %95 {offsets = [1, 0, 0], sizes = [1, 16, 8], strides = [1, 1, 1]} : vector<4x16x8xf32> to vector<1x16x8xf32>
    %99 = vector.shape_cast %98 : vector<1x16x8xf32> to vector<16x8xf32>
    %100 = vector.extract_strided_slice %95 {offsets = [2, 0, 0], sizes = [1, 16, 8], strides = [1, 1, 1]} : vector<4x16x8xf32> to vector<1x16x8xf32>
    %101 = vector.shape_cast %100 : vector<1x16x8xf32> to vector<16x8xf32>
    %102 = vector.extract_strided_slice %95 {offsets = [3, 0, 0], sizes = [1, 16, 8], strides = [1, 1, 1]} : vector<4x16x8xf32> to vector<1x16x8xf32>
    %103 = vector.shape_cast %102 : vector<1x16x8xf32> to vector<16x8xf32>
    %104 = tpu.concatenate %97, %99, %101, %103 in 1 : vector<16x8xf32>, vector<16x8xf32>, vector<16x8xf32>, vector<16x8xf32> -> vector<16x32xf32>
    %c0_24 = arith.constant 0 : index
    %c0_25 = arith.constant 0 : index
    %c0_26 = arith.constant 0 : index
    %105 = vector.load %arg4[%c0_24, %c0_25, %c0_26] : memref<2x32x32xf32, #tpu.memory_space<vmem>>, vector<1x32x32xf32>
    %106 = vector.shape_cast %105 : vector<1x32x32xf32> to vector<32x32xf32>
    %cst_27 = arith.constant dense<0.000000e+00> : vector<16x32xf32>
    %107 = tpu.matmul %104, %106, %cst_27 {dimension_numbers = #tpu.dot_dimension_numbers<[1], [0], [0], [1], [0, 0, 1, 1], [], []>} : vector<16x32xf32>, vector<32x32xf32>, vector<16x32xf32> -> vector<16x32xf32>
    %108 = vector.broadcast %30 : vector<1x32xf32> to vector<16x32xf32>
    %109 = arith.addf %107, %108 : vector<16x32xf32>
    %110 = arith.addf %9, %109 : vector<16x32xf32>
    %cst_28 = arith.constant dense<0.000000e+00> : vector<16xf32>
    %111 = vector.multi_reduction <add>, %110, %cst_28 [1] : vector<16x32xf32> to vector<16xf32>
    %112 = vector.shape_cast %111 : vector<16xf32> to vector<16x1xf32>
    %cst_29 = arith.constant 3.200000e+01 : f32
    %113 = vector.broadcast %cst_29 : f32 to vector<16x1xf32>
    %114 = arith.divf %112, %113 : vector<16x1xf32>
    %115 = vector.broadcast %114 : vector<16x1xf32> to vector<16x32xf32>
    %116 = arith.subf %110, %115 : vector<16x32xf32>
    %117 = arith.mulf %116, %116 : vector<16x32xf32>
    %cst_30 = arith.constant dense<0.000000e+00> : vector<16xf32>
    %118 = vector.multi_reduction <add>, %117, %cst_30 [1] : vector<16x32xf32> to vector<16xf32>
    %119 = vector.shape_cast %118 : vector<16xf32> to vector<16x1xf32>
    %cst_31 = arith.constant 3.200000e+01 : f32
    %120 = vector.broadcast %cst_31 : f32 to vector<16x1xf32>
    %121 = arith.divf %119, %120 : vector<16x1xf32>
    %122 = vector.broadcast %114 : vector<16x1xf32> to vector<16x32xf32>
    %123 = arith.subf %110, %122 : vector<16x32xf32>
    %cst_32 = arith.constant 9.99999974E-6 : f32
    %124 = vector.broadcast %cst_32 : f32 to vector<16x1xf32>
    %125 = arith.addf %121, %124 : vector<16x1xf32>
    %126 = math.rsqrt %125 : vector<16x1xf32>
    %127 = vector.broadcast %126 : vector<16x1xf32> to vector<16x32xf32>
    %128 = arith.mulf %123, %127 : vector<16x32xf32>
    %129 = vector.broadcast %28 : vector<1x32xf32> to vector<16x32xf32>
    %130 = arith.mulf %128, %129 : vector<16x32xf32>
    %131 = vector.broadcast %29 : vector<1x32xf32> to vector<16x32xf32>
    %132 = arith.addf %130, %131 : vector<16x32xf32>
    %c0_33 = arith.constant 0 : index
    %c0_34 = arith.constant 0 : index
    %c0_35 = arith.constant 0 : index
    %133 = vector.load %arg5[%c0_33, %c0_34, %c0_35] : memref<2x32x128xf32, #tpu.memory_space<vmem>>, vector<1x32x128xf32>
    %134 = vector.shape_cast %133 : vector<1x32x128xf32> to vector<32x128xf32>
    %cst_36 = arith.constant dense<0.000000e+00> : vector<16x128xf32>
    %135 = tpu.matmul %132, %134, %cst_36 {dimension_numbers = #tpu.dot_dimension_numbers<[1], [0], [0], [1], [0, 0, 1, 1], [], []>} : vector<16x32xf32>, vector<32x128xf32>, vector<16x128xf32> -> vector<16x128xf32>
    %c0_37 = arith.constant 0 : index
    %c0_38 = arith.constant 0 : index
    %c0_39 = arith.constant 0 : index
    %136 = vector.load %arg8[%c0_37, %c0_38, %c0_39] : memref<2x1x128xf32, #tpu.memory_space<vmem>>, vector<1x1x128xf32>
    %137 = vector.shape_cast %136 : vector<1x1x128xf32> to vector<1x128xf32>
    %138 = vector.broadcast %137 : vector<1x128xf32> to vector<16x128xf32>
    %139 = arith.addf %135, %138 : vector<16x128xf32>
    %cst_40 = arith.constant 0.000000e+00 : f32
    %140 = vector.broadcast %cst_40 : f32 to vector<16x128xf32>
    %141 = arith.maximumf %139, %140 : vector<16x128xf32>
    %c0_41 = arith.constant 0 : index
    %c0_42 = arith.constant 0 : index
    %c0_43 = arith.constant 0 : index
    %142 = vector.load %arg6[%c0_41, %c0_42, %c0_43] : memref<2x128x32xf32, #tpu.memory_space<vmem>>, vector<1x128x32xf32>
    %143 = vector.shape_cast %142 : vector<1x128x32xf32> to vector<128x32xf32>
    %cst_44 = arith.constant dense<0.000000e+00> : vector<16x32xf32>
    %144 = tpu.matmul %141, %143, %cst_44 {dimension_numbers = #tpu.dot_dimension_numbers<[1], [0], [0], [1], [0, 0, 1, 1], [], []>} : vector<16x128xf32>, vector<128x32xf32>, vector<16x32xf32> -> vector<16x32xf32>
    %145 = arith.addf %110, %144 : vector<16x32xf32>
    %146 = vector.broadcast %31 : vector<1x32xf32> to vector<16x32xf32>
    %147 = arith.addf %145, %146 : vector<16x32xf32>
    %c1 = arith.constant 1 : index
    %c0_45 = arith.constant 0 : index
    %c0_46 = arith.constant 0 : index
    %148 = vector.load %arg7[%c1, %c0_45, %c0_46] : memref<2x6x32xf32, #tpu.memory_space<vmem>>, vector<1x6x32xf32>
    %149 = vector.shape_cast %148 : vector<1x6x32xf32> to vector<6x32xf32>
    %150 = vector.extract_strided_slice %149 {offsets = [0, 0], sizes = [1, 32], strides = [1, 1]} : vector<6x32xf32> to vector<1x32xf32>
    %151 = vector.extract_strided_slice %149 {offsets = [1, 0], sizes = [1, 32], strides = [1, 1]} : vector<6x32xf32> to vector<1x32xf32>
    %152 = vector.extract_strided_slice %149 {offsets = [2, 0], sizes = [1, 32], strides = [1, 1]} : vector<6x32xf32> to vector<1x32xf32>
    %153 = vector.extract_strided_slice %149 {offsets = [3, 0], sizes = [1, 32], strides = [1, 1]} : vector<6x32xf32> to vector<1x32xf32>
    %154 = vector.extract_strided_slice %149 {offsets = [4, 0], sizes = [1, 32], strides = [1, 1]} : vector<6x32xf32> to vector<1x32xf32>
    %155 = vector.extract_strided_slice %149 {offsets = [5, 0], sizes = [1, 32], strides = [1, 1]} : vector<6x32xf32> to vector<1x32xf32>
    %cst_47 = arith.constant dense<0.000000e+00> : vector<16xf32>
    %156 = vector.multi_reduction <add>, %147, %cst_47 [1] : vector<16x32xf32> to vector<16xf32>
    %157 = vector.shape_cast %156 : vector<16xf32> to vector<16x1xf32>
    %cst_48 = arith.constant 3.200000e+01 : f32
    %158 = vector.broadcast %cst_48 : f32 to vector<16x1xf32>
    %159 = arith.divf %157, %158 : vector<16x1xf32>
    %160 = vector.broadcast %159 : vector<16x1xf32> to vector<16x32xf32>
    %161 = arith.subf %147, %160 : vector<16x32xf32>
    %162 = arith.mulf %161, %161 : vector<16x32xf32>
    %cst_49 = arith.constant dense<0.000000e+00> : vector<16xf32>
    %163 = vector.multi_reduction <add>, %162, %cst_49 [1] : vector<16x32xf32> to vector<16xf32>
    %164 = vector.shape_cast %163 : vector<16xf32> to vector<16x1xf32>
    %cst_50 = arith.constant 3.200000e+01 : f32
    %165 = vector.broadcast %cst_50 : f32 to vector<16x1xf32>
    %166 = arith.divf %164, %165 : vector<16x1xf32>
    %167 = vector.broadcast %159 : vector<16x1xf32> to vector<16x32xf32>
    %168 = arith.subf %147, %167 : vector<16x32xf32>
    %cst_51 = arith.constant 9.99999974E-6 : f32
    %169 = vector.broadcast %cst_51 : f32 to vector<16x1xf32>
    %170 = arith.addf %166, %169 : vector<16x1xf32>
    %171 = math.rsqrt %170 : vector<16x1xf32>
    %172 = vector.broadcast %171 : vector<16x1xf32> to vector<16x32xf32>
    %173 = arith.mulf %168, %172 : vector<16x32xf32>
    %174 = vector.broadcast %150 : vector<1x32xf32> to vector<16x32xf32>
    %175 = arith.mulf %173, %174 : vector<16x32xf32>
    %176 = vector.broadcast %151 : vector<1x32xf32> to vector<16x32xf32>
    %177 = arith.addf %175, %176 : vector<16x32xf32>
    %c1_52 = arith.constant 1 : index
    %c0_53 = arith.constant 0 : index
    %c0_54 = arith.constant 0 : index
    %178 = vector.load %arg3[%c1_52, %c0_53, %c0_54] : memref<2x32x96xf32, #tpu.memory_space<vmem>>, vector<1x32x96xf32>
    %179 = vector.shape_cast %178 : vector<1x32x96xf32> to vector<32x96xf32>
    %cst_55 = arith.constant dense<0.000000e+00> : vector<16x96xf32>
    %180 = tpu.matmul %177, %179, %cst_55 {dimension_numbers = #tpu.dot_dimension_numbers<[1], [0], [0], [1], [0, 0, 1, 1], [], []>} : vector<16x32xf32>, vector<32x96xf32>, vector<16x96xf32> -> vector<16x96xf32>
    %181 = vector.extract_strided_slice %180 {offsets = [0, 0], sizes = [16, 8], strides = [1, 1]} : vector<16x96xf32> to vector<16x8xf32>
    %182 = vector.extract_strided_slice %180 {offsets = [0, 8], sizes = [16, 8], strides = [1, 1]} : vector<16x96xf32> to vector<16x8xf32>
    %183 = vector.extract_strided_slice %180 {offsets = [0, 16], sizes = [16, 8], strides = [1, 1]} : vector<16x96xf32> to vector<16x8xf32>
    %184 = vector.extract_strided_slice %180 {offsets = [0, 24], sizes = [16, 8], strides = [1, 1]} : vector<16x96xf32> to vector<16x8xf32>
    %185 = vector.shape_cast %181 : vector<16x8xf32> to vector<1x16x8xf32>
    %186 = vector.shape_cast %182 : vector<16x8xf32> to vector<1x16x8xf32>
    %187 = vector.shape_cast %183 : vector<16x8xf32> to vector<1x16x8xf32>
    %188 = vector.shape_cast %184 : vector<16x8xf32> to vector<1x16x8xf32>
    %189 = tpu.concatenate %185, %186, %187, %188 in 0 : vector<1x16x8xf32>, vector<1x16x8xf32>, vector<1x16x8xf32>, vector<1x16x8xf32> -> vector<4x16x8xf32>
    %190 = vector.extract_strided_slice %180 {offsets = [0, 32], sizes = [16, 8], strides = [1, 1]} : vector<16x96xf32> to vector<16x8xf32>
    %191 = vector.extract_strided_slice %180 {offsets = [0, 40], sizes = [16, 8], strides = [1, 1]} : vector<16x96xf32> to vector<16x8xf32>
    %192 = vector.extract_strided_slice %180 {offsets = [0, 48], sizes = [16, 8], strides = [1, 1]} : vector<16x96xf32> to vector<16x8xf32>
    %193 = vector.extract_strided_slice %180 {offsets = [0, 56], sizes = [16, 8], strides = [1, 1]} : vector<16x96xf32> to vector<16x8xf32>
    %194 = vector.shape_cast %190 : vector<16x8xf32> to vector<1x16x8xf32>
    %195 = vector.shape_cast %191 : vector<16x8xf32> to vector<1x16x8xf32>
    %196 = vector.shape_cast %192 : vector<16x8xf32> to vector<1x16x8xf32>
    %197 = vector.shape_cast %193 : vector<16x8xf32> to vector<1x16x8xf32>
    %198 = tpu.concatenate %194, %195, %196, %197 in 0 : vector<1x16x8xf32>, vector<1x16x8xf32>, vector<1x16x8xf32>, vector<1x16x8xf32> -> vector<4x16x8xf32>
    %199 = vector.extract_strided_slice %180 {offsets = [0, 64], sizes = [16, 8], strides = [1, 1]} : vector<16x96xf32> to vector<16x8xf32>
    %200 = vector.extract_strided_slice %180 {offsets = [0, 72], sizes = [16, 8], strides = [1, 1]} : vector<16x96xf32> to vector<16x8xf32>
    %201 = vector.extract_strided_slice %180 {offsets = [0, 80], sizes = [16, 8], strides = [1, 1]} : vector<16x96xf32> to vector<16x8xf32>
    %202 = vector.extract_strided_slice %180 {offsets = [0, 88], sizes = [16, 8], strides = [1, 1]} : vector<16x96xf32> to vector<16x8xf32>
    %203 = vector.shape_cast %199 : vector<16x8xf32> to vector<1x16x8xf32>
    %204 = vector.shape_cast %200 : vector<16x8xf32> to vector<1x16x8xf32>
    %205 = vector.shape_cast %201 : vector<16x8xf32> to vector<1x16x8xf32>
    %206 = vector.shape_cast %202 : vector<16x8xf32> to vector<1x16x8xf32>
    %207 = tpu.concatenate %203, %204, %205, %206 in 0 : vector<1x16x8xf32>, vector<1x16x8xf32>, vector<1x16x8xf32>, vector<1x16x8xf32> -> vector<4x16x8xf32>
    "tpu.trace_start"() <{level = 10 : i32, message = "hqd,hkd->hqk"}> : () -> ()
    %cst_56 = arith.constant dense<0.000000e+00> : vector<4x16x16xf32>
    %208 = tpu.matmul %189, %198, %cst_56 {dimension_numbers = #tpu.dot_dimension_numbers<[2], [2], [1], [1], [0, 0, 0, 1, 1, 1], [0], [0]>} : vector<4x16x8xf32>, vector<4x16x8xf32>, vector<4x16x16xf32> -> vector<4x16x16xf32>
    "tpu.trace_stop"() : () -> ()
    %209 = arith.addf %208, %23 : vector<4x16x16xf32>
    %cst_57 = arith.constant dense<0xFF800000> : vector<4x16xf32>
    %210 = vector.multi_reduction <maximumf>, %209, %cst_57 [2] : vector<4x16x16xf32> to vector<4x16xf32>
    %211 = vector.shape_cast %210 : vector<4x16xf32> to vector<4x16x1xf32>
    %212 = vector.broadcast %211 : vector<4x16x1xf32> to vector<4x16x16xf32>
    %213 = arith.subf %209, %212 : vector<4x16x16xf32>
    %214 = math.exp %213 : vector<4x16x16xf32>
    %cst_58 = arith.constant dense<0.000000e+00> : vector<4x16xf32>
    %215 = vector.multi_reduction <add>, %214, %cst_58 [2] : vector<4x16x16xf32> to vector<4x16xf32>
    %216 = vector.shape_cast %215 : vector<4x16xf32> to vector<4x16x1xf32>
    %217 = vector.broadcast %216 : vector<4x16x1xf32> to vector<4x16x16xf32>
    %218 = arith.divf %214, %217 : vector<4x16x16xf32>
    "tpu.trace_start"() <{level = 10 : i32, message = "hqk,hkd->hqd"}> : () -> ()
    %cst_59 = arith.constant dense<0.000000e+00> : vector<4x16x8xf32>
    %219 = tpu.matmul %218, %207, %cst_59 {dimension_numbers = #tpu.dot_dimension_numbers<[2], [1], [1], [2], [0, 0, 0, 1, 1, 2], [0], [0]>} : vector<4x16x16xf32>, vector<4x16x8xf32>, vector<4x16x8xf32> -> vector<4x16x8xf32>
    "tpu.trace_stop"() : () -> ()
    %220 = vector.extract_strided_slice %219 {offsets = [0, 0, 0], sizes = [1, 16, 8], strides = [1, 1, 1]} : vector<4x16x8xf32> to vector<1x16x8xf32>
    %221 = vector.shape_cast %220 : vector<1x16x8xf32> to vector<16x8xf32>
    %222 = vector.extract_strided_slice %219 {offsets = [1, 0, 0], sizes = [1, 16, 8], strides = [1, 1, 1]} : vector<4x16x8xf32> to vector<1x16x8xf32>
    %223 = vector.shape_cast %222 : vector<1x16x8xf32> to vector<16x8xf32>
    %224 = vector.extract_strided_slice %219 {offsets = [2, 0, 0], sizes = [1, 16, 8], strides = [1, 1, 1]} : vector<4x16x8xf32> to vector<1x16x8xf32>
    %225 = vector.shape_cast %224 : vector<1x16x8xf32> to vector<16x8xf32>
    %226 = vector.extract_strided_slice %219 {offsets = [3, 0, 0], sizes = [1, 16, 8], strides = [1, 1, 1]} : vector<4x16x8xf32> to vector<1x16x8xf32>
    %227 = vector.shape_cast %226 : vector<1x16x8xf32> to vector<16x8xf32>
    %228 = tpu.concatenate %221, %223, %225, %227 in 1 : vector<16x8xf32>, vector<16x8xf32>, vector<16x8xf32>, vector<16x8xf32> -> vector<16x32xf32>
    %c1_60 = arith.constant 1 : index
    %c0_61 = arith.constant 0 : index
    %c0_62 = arith.constant 0 : index
    %229 = vector.load %arg4[%c1_60, %c0_61, %c0_62] : memref<2x32x32xf32, #tpu.memory_space<vmem>>, vector<1x32x32xf32>
    %230 = vector.shape_cast %229 : vector<1x32x32xf32> to vector<32x32xf32>
    %cst_63 = arith.constant dense<0.000000e+00> : vector<16x32xf32>
    %231 = tpu.matmul %228, %230, %cst_63 {dimension_numbers = #tpu.dot_dimension_numbers<[1], [0], [0], [1], [0, 0, 1, 1], [], []>} : vector<16x32xf32>, vector<32x32xf32>, vector<16x32xf32> -> vector<16x32xf32>
    %232 = vector.broadcast %154 : vector<1x32xf32> to vector<16x32xf32>
    %233 = arith.addf %231, %232 : vector<16x32xf32>
    %234 = arith.addf %147, %233 : vector<16x32xf32>
    %cst_64 = arith.constant dense<0.000000e+00> : vector<16xf32>
    %235 = vector.multi_reduction <add>, %234, %cst_64 [1] : vector<16x32xf32> to vector<16xf32>
    %236 = vector.shape_cast %235 : vector<16xf32> to vector<16x1xf32>
    %cst_65 = arith.constant 3.200000e+01 : f32
    %237 = vector.broadcast %cst_65 : f32 to vector<16x1xf32>
    %238 = arith.divf %236, %237 : vector<16x1xf32>
    %239 = vector.broadcast %238 : vector<16x1xf32> to vector<16x32xf32>
    %240 = arith.subf %234, %239 : vector<16x32xf32>
    %241 = arith.mulf %240, %240 : vector<16x32xf32>
    %cst_66 = arith.constant dense<0.000000e+00> : vector<16xf32>
    %242 = vector.multi_reduction <add>, %241, %cst_66 [1] : vector<16x32xf32> to vector<16xf32>
    %243 = vector.shape_cast %242 : vector<16xf32> to vector<16x1xf32>
    %cst_67 = arith.constant 3.200000e+01 : f32
    %244 = vector.broadcast %cst_67 : f32 to vector<16x1xf32>
    %245 = arith.divf %243, %244 : vector<16x1xf32>
    %246 = vector.broadcast %238 : vector<16x1xf32> to vector<16x32xf32>
    %247 = arith.subf %234, %246 : vector<16x32xf32>
    %cst_68 = arith.constant 9.99999974E-6 : f32
    %248 = vector.broadcast %cst_68 : f32 to vector<16x1xf32>
    %249 = arith.addf %245, %248 : vector<16x1xf32>
    %250 = math.rsqrt %249 : vector<16x1xf32>
    %251 = vector.broadcast %250 : vector<16x1xf32> to vector<16x32xf32>
    %252 = arith.mulf %247, %251 : vector<16x32xf32>
    %253 = vector.broadcast %152 : vector<1x32xf32> to vector<16x32xf32>
    %254 = arith.mulf %252, %253 : vector<16x32xf32>
    %255 = vector.broadcast %153 : vector<1x32xf32> to vector<16x32xf32>
    %256 = arith.addf %254, %255 : vector<16x32xf32>
    %c1_69 = arith.constant 1 : index
    %c0_70 = arith.constant 0 : index
    %c0_71 = arith.constant 0 : index
    %257 = vector.load %arg5[%c1_69, %c0_70, %c0_71] : memref<2x32x128xf32, #tpu.memory_space<vmem>>, vector<1x32x128xf32>
    %258 = vector.shape_cast %257 : vector<1x32x128xf32> to vector<32x128xf32>
    %cst_72 = arith.constant dense<0.000000e+00> : vector<16x128xf32>
    %259 = tpu.matmul %256, %258, %cst_72 {dimension_numbers = #tpu.dot_dimension_numbers<[1], [0], [0], [1], [0, 0, 1, 1], [], []>} : vector<16x32xf32>, vector<32x128xf32>, vector<16x128xf32> -> vector<16x128xf32>
    %c1_73 = arith.constant 1 : index
    %c0_74 = arith.constant 0 : index
    %c0_75 = arith.constant 0 : index
    %260 = vector.load %arg8[%c1_73, %c0_74, %c0_75] : memref<2x1x128xf32, #tpu.memory_space<vmem>>, vector<1x1x128xf32>
    %261 = vector.shape_cast %260 : vector<1x1x128xf32> to vector<1x128xf32>
    %262 = vector.broadcast %261 : vector<1x128xf32> to vector<16x128xf32>
    %263 = arith.addf %259, %262 : vector<16x128xf32>
    %cst_76 = arith.constant 0.000000e+00 : f32
    %264 = vector.broadcast %cst_76 : f32 to vector<16x128xf32>
    %265 = arith.maximumf %263, %264 : vector<16x128xf32>
    %c1_77 = arith.constant 1 : index
    %c0_78 = arith.constant 0 : index
    %c0_79 = arith.constant 0 : index
    %266 = vector.load %arg6[%c1_77, %c0_78, %c0_79] : memref<2x128x32xf32, #tpu.memory_space<vmem>>, vector<1x128x32xf32>
    %267 = vector.shape_cast %266 : vector<1x128x32xf32> to vector<128x32xf32>
    %cst_80 = arith.constant dense<0.000000e+00> : vector<16x32xf32>
    %268 = tpu.matmul %265, %267, %cst_80 {dimension_numbers = #tpu.dot_dimension_numbers<[1], [0], [0], [1], [0, 0, 1, 1], [], []>} : vector<16x128xf32>, vector<128x32xf32>, vector<16x32xf32> -> vector<16x32xf32>
    %269 = arith.addf %234, %268 : vector<16x32xf32>
    %270 = vector.broadcast %155 : vector<1x32xf32> to vector<16x32xf32>
    %271 = arith.addf %269, %270 : vector<16x32xf32>
    %c0_81 = arith.constant 0 : index
    %c0_82 = arith.constant 0 : index
    %272 = vector.load %arg9[%c0_81, %c0_82] : memref<2x32xf32, #tpu.memory_space<vmem>>, vector<2x32xf32>
    %273 = vector.extract_strided_slice %272 {offsets = [0, 0], sizes = [1, 32], strides = [1, 1]} : vector<2x32xf32> to vector<1x32xf32>
    %274 = vector.extract_strided_slice %272 {offsets = [1, 0], sizes = [1, 32], strides = [1, 1]} : vector<2x32xf32> to vector<1x32xf32>
    %cst_83 = arith.constant dense<0.000000e+00> : vector<16xf32>
    %275 = vector.multi_reduction <add>, %271, %cst_83 [1] : vector<16x32xf32> to vector<16xf32>
    %276 = vector.shape_cast %275 : vector<16xf32> to vector<16x1xf32>
    %cst_84 = arith.constant 3.200000e+01 : f32
    %277 = vector.broadcast %cst_84 : f32 to vector<16x1xf32>
    %278 = arith.divf %276, %277 : vector<16x1xf32>
    %279 = vector.broadcast %278 : vector<16x1xf32> to vector<16x32xf32>
    %280 = arith.subf %271, %279 : vector<16x32xf32>
    %281 = arith.mulf %280, %280 : vector<16x32xf32>
    %cst_85 = arith.constant dense<0.000000e+00> : vector<16xf32>
    %282 = vector.multi_reduction <add>, %281, %cst_85 [1] : vector<16x32xf32> to vector<16xf32>
    %283 = vector.shape_cast %282 : vector<16xf32> to vector<16x1xf32>
    %cst_86 = arith.constant 3.200000e+01 : f32
    %284 = vector.broadcast %cst_86 : f32 to vector<16x1xf32>
    %285 = arith.divf %283, %284 : vector<16x1xf32>
    %286 = vector.broadcast %278 : vector<16x1xf32> to vector<16x32xf32>
    %287 = arith.subf %271, %286 : vector<16x32xf32>
    %cst_87 = arith.constant 9.99999974E-6 : f32
    %288 = vector.broadcast %cst_87 : f32 to vector<16x1xf32>
    %289 = arith.addf %285, %288 : vector<16x1xf32>
    %290 = math.rsqrt %289 : vector<16x1xf32>
    %291 = vector.broadcast %290 : vector<16x1xf32> to vector<16x32xf32>
    %292 = arith.mulf %287, %291 : vector<16x32xf32>
    %293 = vector.broadcast %273 : vector<1x32xf32> to vector<16x32xf32>
    %294 = arith.mulf %292, %293 : vector<16x32xf32>
    %295 = vector.broadcast %274 : vector<1x32xf32> to vector<16x32xf32>
    %296 = arith.addf %294, %295 : vector<16x32xf32>
    %c0_88 = arith.constant 0 : index
    %c0_89 = arith.constant 0 : index
    %297 = vector.load %arg10[%c0_88, %c0_89] : memref<32x128xf32, #tpu.memory_space<vmem>>, vector<32x128xf32>
    %cst_90 = arith.constant dense<0.000000e+00> : vector<16x128xf32>
    %298 = tpu.matmul %296, %297, %cst_90 {dimension_numbers = #tpu.dot_dimension_numbers<[1], [0], [0], [1], [0, 0, 1, 1], [], []>} : vector<16x32xf32>, vector<32x128xf32>, vector<16x128xf32> -> vector<16x128xf32>
    %c0_91 = arith.constant 0 : index
    %c0_92 = arith.constant 0 : index
    %299 = vector.load %arg11[%c0_91, %c0_92] : memref<1x128xf32, #tpu.memory_space<vmem>>, vector<1x128xf32>
    %300 = vector.broadcast %299 : vector<1x128xf32> to vector<16x128xf32>
    %301 = arith.addf %298, %300 : vector<16x128xf32>
    %c0_93 = arith.constant 0 : index
    %c0_94 = arith.constant 0 : index
    %302 = vector.load %arg12[%c0_93, %c0_94] : memref<16x128xf32, #tpu.memory_space<vmem>>, vector<16x128xf32>
    tpu.vector_store %arg12[%c0_93, %c0_94], %301 {strides = array<i32>} : memref<16x128xf32, #tpu.memory_space<vmem>>, vector<16x128xf32>,
    return
  }
}

</mosaic_0001>

<bundles_post_ra>
// kernel: language_model_forward.1
= control target key start
LH: loop header
LB: loop body
LE: loop exit
PB: predicated region body
PF: predicated region fallthrough
CT: control target
= control target key end

     0   :  { %v1998_v0 = vmov 0   ;;  %v43_v11 = vlaneseq  ;;  %vm67_vm0 = vcmask 523264   ;;  %v1999_v14 = vmov 0.0   ;;  %s2001_s16 = smov 104   ;;  %s2002_s17 = smov 120   ;;  %s2969_s0 = inlined_call_operand.vmem [shape: s32[16,1], index: 0, kind: input, shape index: {}]   ;;  %s2970_s1 = inlined_call_operand.vmem [shape: f32[64,32], index: 1, kind: input, shape index: {}]   ;;  %s2971_s2 = inlined_call_operand.vmem [shape: f32[16,32], index: 2, kind: input, shape index: {}]   ;;  %s2972_s3 = inlined_call_operand.vmem [shape: f32[2,32,96], index: 3, kind: input, shape index: {}]   ;;  %s2973_s7 = inlined_call_operand.vmem [shape: f32[2,6,32], index: 7, kind: input, shape index: {}]   ;;  %s2974_s4 = inlined_call_operand.vmem [shape: f32[2,32,32], index: 4, kind: input, shape index: {}]   ;;  %s2975_s8 = inlined_call_operand.vmem [shape: f32[2,1,128], index: 8, kind: input, shape index: {}]   ;;  %s2976_s5 = inlined_call_operand.vmem [shape: f32[2,32,128], index: 5, kind: input, shape index: {}]   ;;  %s2977_s6 = inlined_call_operand.vmem [shape: f32[2,128,32], index: 6, kind: input, shape index: {}]   ;;  %s2978_s11 = inlined_call_operand.vmem [shape: f32[1,128], index: 11, kind: input, shape index: {}]   ;;  %s2979_s10 = inlined_call_operand.vmem [shape: f32[32,128], index: 10, kind: input, shape index: {}]   ;;  %s2980_s9 = inlined_call_operand.vmem [shape: f32[2,32], index: 9, kind: input, shape index: {}]   ;;  %s2981_s12 = inlined_call_operand.vmem [shape: f32[16,128], index: 12, kind: output, shape index: {}]  }
   0x1   :  { %1868 = vset.pattern.permute.xlu0 %v1998_v0  ;;  %v41_v1 = vld [vmem:[%s2969_s0] sm:$0xff]  ;;  %v64_v2 = vld [vmem:[%s2970_s1 + $0x38] sm:$0xff]  ;;  %v63_v3 = vld [vmem:[%s2970_s1 + $0x30] sm:$0xff]  ;;  %vm112_vm3 = vcmask 261120   ;;  %v2000_v26 = vmov 32.0   ;;  %s2003_s18 = smov 112  }
   0x2   :  { %46 = vperm.xlu0 %1868, %v41_v1   ;;  %82 = vmatpush.msra.mxu0 %v64_v2  ;;  %v62_v4 = vld [vmem:[%s2970_s1 + $0x28] sm:$0xff]  ;;  %v61_v5 = vld [vmem:[%s2970_s1 + $0x20] sm:$0xff]  ;;  %v60_v7 = vld [vmem:[%s2970_s1 + $0x18] sm:$0xff]  ;;  %v2106_v12 = vand.u32 127, %v43_v11  ;;  %1912 = vrcp.f32 %v2000_v26  ;;  %s2004_s19 = smov 96   ;;  %vm221_vm11 = vcmask 64512  }
   0x3   :  { %v42_v6 = vld [vmem:[%s2969_s0 + $0x8] sm:$0xff]  ;;  %v59_v8 = vld [vmem:[%s2970_s1 + $0x10] sm:$0xff]  ;;  %v57_v10 = vld [vmem:[%s2970_s1] sm:$0xff]  ;;  %vm358_vm15 = vcmask 130048   ;;  %s2006_s20 = smov 64   ;;  %s2007_s21 = smov 16  }
   0x4   :  { %83 = vmatpush.msra.mxu0 %v63_v3  ;;  %v58_v9 = vld [vmem:[%s2970_s1 + $0x8] sm:$0xff]  ;;  %v65_v18 = vld [vmem:[%s2971_s2] sm:$0xff]  ;;  %v173_v43 = vld [vmem:[%s2972_s3 + $0x18] sm:$0xff]  ;;  %s2008_s22 = smov 24   ;;  %s2009_s0 = smov 8  }
   0x5   :  { %v66_v22 = vld [vmem:[%s2971_s2 + $0x8] sm:$0xff]  ;;  %192 = vmatpush.msra.mxu1 %v173_v43  ;;  %v172_v44 = vld [vmem:[%s2972_s3 + $0x10] sm:$0xff]  ;;  %v170_v46 = vld [vmem:[%s2972_s3] sm:$0xff] }
   0x6   :  { %84 = vmatpush.msra.mxu0 %v62_v4  ;;  %v171_v45 = vld [vmem:[%s2972_s3 + $0x8] sm:$0xff]  ;;  %v2149_v58 = vld [vmem:[%s2973_s7] sm:$0x3f] }
   0x7   :  { %193 = vmatpush.msra.mxu1 %v172_v44  ;;  %v164_v62 = vperm.slane %v2149_v58, 0  ;;  %v167_v2 = vperm.slane %v2149_v58, 1 }
   0x8   :  { %85 = vmatpush.msra.mxu0 %v61_v5  ;;  %v1913_v27 = vpop.eup %1912 }
   0x9   :  { %v120_v28 = vmul.f32 32.0, %v1913_v27  ;;  %vm124_vm4 = vweird.f32 %v1913_v27  ;;  %194 = vmatpush.msra.mxu1 %v171_v45 }
   0xa   :  { %49 = vperm.xlu0 %1868, %v42_v6   ;;  %86 = vmatpush.msra.mxu0 %v60_v7 }
   0xb   :  { %v121_v29 = vsub.f32 1.0, %v120_v28  ;;  %195 = vmatpush.msra.mxu1 %v170_v46 }
   0xc   :  { %87 = vmatpush.msra.mxu0 %v59_v8 }
   0xd   :  { %v122_v30 = vmul.f32 %v1913_v27, %v121_v29 }
   0xe   :  { %88 = vmatpush.msra.mxu0 %v58_v9 }
   0xf   :  { %v123_v31 = vadd.f32 %v1913_v27, %v122_v30 }
  0x10   :  { %89 = vmatpush.msra.mxu0 %v57_v10 }
  0x11   :  { %v2124_v32 = vsel %vm124_vm4, %v1913_v27, %v123_v31 }
  0x74   :  { %v47_v13 = vpop.permute.xlu0 %46 }
  0x75   :  { %vm51_vm1 = vcmp.eq.s32.totalorder %v47_v13, %v2106_v12 }
  0x76   :  { %v1760_v15 = vsel %vm51_vm1, 1.0, %v1999_v14 }
  0x77   :  { %1762 = vmatmul.msk.f32.vlgmr.msra.gmra.mxu0 %vm67_vm0, %v1760_v15 }
  0x7c   :  { %v50_v16 = vpop.permute.xlu0 %49 }
  0x7d   :  { %vm52_vm2 = vcmp.eq.s32.totalorder %v50_v16, %v2106_v12 }
  0x7e   :  { %v1761_v17 = vsel %vm52_vm2, 1.0, %v1999_v14 }
  0x7f   :  { %1763 = vmatmul.msk.f32.gmra.mxu0 %vm67_vm0, %v1761_v17 }
  0xf4   :  { %v91_v19 = vpop.f32.mrf.mxu0 }
  0xf5   :  { %v2113_v20 = vadd.f32 %v91_v19, %v65_v18 }
  0xf7   :  { %v113_v21 = vsel %vm112_vm3, %v2113_v20, 0.0 }
  0xf8   :  { %114 = vadd.xlane.f32.xlu1 %v113_v21 }
  0xfc   :  { %v94_v23 = vpop.f32.mrf.mxu0 }
  0xfd   :  { %v2120_v24 = vadd.f32 %v94_v23, %v66_v22 }
  0xff   :  { %v116_v25 = vsel %vm112_vm3, %v2120_v24, 0.0 }
 0x100   :  { %117 = vadd.xlane.f32.xlu1 %v116_v25 }
 0x16b   :  { %v115_v33 = vpop.xlane.xlu1 %114 }
 0x16c   :  { %v126_v34 = vmul.f32 %v2124_v32, %v115_v33  ;;  %v98_v33 = vshrl.u32 %v43_v11, 7 }
 0x16e   :  { %v128_v35 = vsub.f32 %v2113_v20, %v126_v34  ;;  %v100_v34 = vshrl.u32 %v98_v33, 3  ;;  %vm105_vm13 = vcmp.le.s32.totalorder %v2106_v12, %v98_v33 }
 0x170   :  { %v130_v36 = vmul.f32 %v128_v35, %v128_v35 }
 0x172   :  { %v132_v37 = vsel %vm112_vm3, %v130_v36, 0.0  ;;  %v2005_v36 = vmov -1e+30  }
 0x173   :  { %133 = vadd.xlane.f32.xlu2 %v132_v37  ;;  %v118_v38 = vpop.xlane.xlu1 %117 }
 0x174   :  { %v127_v39 = vmul.f32 %v2124_v32, %v118_v38 }
 0x176   :  { %v129_v40 = vsub.f32 %v2120_v24, %v127_v39 }
 0x178   :  { %v131_v41 = vmul.f32 %v129_v40, %v129_v40 }
 0x17a   :  { %v135_v42 = vsel %vm112_vm3, %v131_v41, 0.0  ;;  %v99_v41 = vadd.s32 8, %v98_v33 }
 0x17b   :  { %136 = vadd.xlane.f32.xlu2 %v135_v42 }
 0x17c   :  { %v101_v42 = vshrl.u32 %v99_v41, 3  ;;  %vm106_vm1 = vcmp.le.s32.totalorder %v2106_v12, %v99_v41 }
 0x1e6   :  { %v134_v47 = vpop.xlane.xlu2 %133 }
 0x1e7   :  { %v138_v48 = vmul.f32 %v134_v47, %v2124_v32 }
 0x1e9   :  { %v140_v49 = vadd.f32 1e-05, %v138_v48 }
 0x1eb   :  { %1914 = vrsqrt.f32 %v140_v49  ;;  %vm148_vm6 = vweird.f32 %v140_v49 }
 0x1ee   :  { %v137_v50 = vpop.xlane.xlu2 %136 }
 0x1ef   :  { %v139_v51 = vmul.f32 %v137_v50, %v2124_v32 }
 0x1f1   :  { %v1915_v52 = vpop.eup %1914  ;;  %v141_v53 = vadd.f32 1e-05, %v139_v51 }
 0x1f2   :  { %v143_v54 = vmul.f32 %v1915_v52, %v140_v49  ;;  %vm149_vm5 = vweird.f32 %v1915_v52 }
 0x1f3   :  { %1916 = vrsqrt.f32 %v141_v53  ;;  %vm150_vm7 = vmor %vm148_vm6, %vm149_vm5  ;;  %vm158_vm9 = vweird.f32 %v141_v53 }
 0x1f4   :  { %v144_v55 = vmul.f32 %v1915_v52, %v143_v54 }
 0x1f6   :  { %v145_v56 = vmul.f32 0.5, %v144_v55 }
 0x1f8   :  { %v146_v57 = vsub.f32 1.5, %v145_v56 }
 0x1f9   :  { %v1917_v59 = vpop.eup %1916 }
 0x1fa   :  { %v147_v60 = vmul.f32 %v1915_v52, %v146_v57  ;;  %v153_v61 = vmul.f32 %v1917_v59, %v141_v53  ;;  %vm159_vm8 = vweird.f32 %v1917_v59 }
 0x1fb   :  { %vm160_vm10 = vmor %vm158_vm9, %vm159_vm8 }
 0x1fc   :  { %v151_v63 = vsel %vm150_vm7, %v1915_v52, %v147_v60  ;;  %v154_v0 = vmul.f32 %v1917_v59, %v153_v61 }
 0x1fd   :  { %v162_v1 = vmul.f32 %v151_v63, %v128_v35  ;;  %v102_v35 = vshrl.u32 %v2106_v12, 3 }
 0x1fe   :  { %v155_v3 = vmul.f32 0.5, %v154_v0 }
 0x1ff   :  { %v165_v4 = vmul.f32 %v164_v62, %v162_v1  ;;  %vm103_vm12 = vcmp.eq.s32.totalorder %v100_v34, %v102_v35  ;;  %vm104_vm0 = vcmp.eq.s32.totalorder %v101_v42, %v102_v35 }
 0x200   :  { %v156_v5 = vsub.f32 1.5, %v155_v3  ;;  %vm107_vm14 = vmand %vm103_vm12, %vm105_vm13 }
 0x201   :  { %v168_v6 = vadd.f32 %v167_v2, %v165_v4  ;;  %v2226_v37 = vsel %vm107_vm14, 0.0, %v2005_v36  ;;  %vm108_vm2 = vmand %vm104_vm0, %vm106_vm1 }
 0x202   :  { %v157_v7 = vmul.f32 %v1917_v59, %v156_v5  ;;  %v2233_v45 = vsel %vm108_vm2, 0.0, %v2005_v36 }
 0x203   :  { %1764 = vmatmul.msk.f32.vlgmr.msra.gmra.mxu1 %vm112_vm3, %v168_v6 }
 0x204   :  { %v161_v8 = vsel %vm160_vm10, %v1917_v59, %v157_v7 }
 0x205   :  { %v163_v9 = vmul.f32 %v161_v8, %v129_v40 }
 0x207   :  { %v166_v10 = vmul.f32 %v164_v62, %v163_v9 }
 0x209   :  { %v169_v13 = vadd.f32 %v167_v2, %v166_v10 }
 0x20b   :  { %1765 = vmatmul.msk.f32.gmra.mxu1 %vm112_vm3, %v169_v13 }
 0x280   :  { %v2155_v14 = vpop.f32.mrf.mxu1 }
 0x281   :  { %213 = vrot.lane.b32.xlu2 %v2155_v14, %s2001_s16 }
 0x288   :  { %v2159_v15 = vpop.f32.mrf.mxu1 }
 0x289   :  { %207 = vrot.lane.b32.xlu1 %v2159_v15, %s2002_s17  ;;  %215 = vrot.lane.b32.xlu0 %v2159_v15, %s2001_s16 }
 0x291   :  { %205 = vrot.lane.b32.xlu0 %v2155_v14, %s2002_s17 }
 0x299   :  { %211 = vrot.lane.b32.xlu0 %v2159_v15, %s2003_s18 }
 0x2a1   :  { %209 = vrot.lane.b32.xlu0 %v2155_v14, %s2003_s18 }
 0x2db   :  { %v2171_v16 = vpop.permute.xlu2 %213 }
 0x2dc   :  { %323 = vrot.lane.b32.xlu0 %v2171_v16, %s2004_s19 }
 0x2fb   :  { %v2175_v17 = vpop.permute.xlu1 %207  ;;  %v2177_v18 = vpop.permute.xlu0 %215 }
 0x2fc   :  { %255 = vrot.lane.b32.xlu1 %v2175_v17, %s2004_s19  ;;  %325 = vrot.lane.b32.xlu2 %v2177_v18, %s2004_s19 }
 0x303   :  { %v2183_v19 = vpop.permute.xlu0 %205 }
 0x304   :  { %253 = vrot.lane.b32.xlu2 %v2183_v19, %s2004_s19 }
 0x30b   :  { %v2187_v21 = vpop.permute.xlu0 %211 }
 0x30c   :  { %219 = vrot.lane.b32.xlu2 %v2159_v15, %s2004_s19  ;;  %290 = vrot.lane.b32.xlu1 %v2187_v21, %s2004_s19 }
 0x313   :  { %v2193_v22 = vpop.permute.xlu0 %209 }
 0x314   :  { %217 = vrot.lane.b32.xlu1 %v2155_v14, %s2004_s19  ;;  %288 = vrot.lane.b32.xlu0 %v2193_v22, %s2004_s19 }
 0x34e   :  { %v324_v25 = vpop.permute.xlu0 %323 }
 0x356   :  { %v326_v23 = vpop.permute.xlu2 %325 }
 0x357   :  { %1778 = vmatpush.xpose.msk.msra.mxu2 %vm221_vm11, %v326_v23 }
 0x35b   :  { %1779 = vmatpush.xpose.msk.msra.mxu2 %vm221_vm11, %v324_v25 }
 0x35e   :  { %v254_v26 = vpop.permute.xlu2 %253  ;;  %1780 = vmatmul.msk.f32.vlgmr.msra.gmra.mxu2 %vm221_vm11, %v2171_v16 }
 0x366   :  { %v220_v27 = vpop.permute.xlu2 %219  ;;  %1781 = vmatmul.msk.f32.gmra.mxu2 %vm221_vm11, %v2177_v18 }
 0x367   :  { %1766 = vmatpush.xpose.msk.msrb.mxu0 %vm221_vm11, %v220_v27 }
 0x36e   :  { %v256_v28 = vpop.permute.xlu1 %255 }
 0x36f   :  { %1770 = vmatpush.xpose.msk.msra.mxu3 %vm221_vm11, %v256_v28 }
 0x373   :  { %1771 = vmatpush.xpose.msk.msra.mxu3 %vm221_vm11, %v254_v26 }
 0x376   :  { %1772 = vmatmul.msk.f32.vlgmr.msra.gmra.mxu3 %vm221_vm11, %v2183_v19 }
 0x37e   :  { %v291_v29 = vpop.permute.xlu1 %290  ;;  %1773 = vmatmul.msk.f32.gmra.mxu3 %vm221_vm11, %v2175_v17 }
 0x37f   :  { %1774 = vmatpush.xpose.msk.msrb.mxu1 %vm221_vm11, %v291_v29 }
 0x386   :  { %v218_v30 = vpop.permute.xlu1 %217  ;;  %v289_v31 = vpop.permute.xlu0 %288 }
 0x387   :  { %1767 = vmatpush.xpose.msk.msrb.mxu0 %vm221_vm11, %v218_v30  ;;  %1775 = vmatpush.xpose.msk.msrb.mxu1 %vm221_vm11, %v289_v31 }
 0x38a   :  { %1768 = vmatmul.msk.f32.vlgmr.msrb.gmra.mxu0 %vm221_vm11, %v2155_v14  ;;  %1776 = vmatmul.msk.f32.vlgmr.msrb.gmra.mxu1 %vm221_vm11, %v2193_v22 }
 0x392   :  { %1769 = vmatmul.msk.f32.gmra.mxu0 %vm221_vm11, %v2159_v15  ;;  %1777 = vmatmul.msk.f32.gmra.mxu1 %vm221_vm11, %v2187_v21 }
 0x3e1   :  { %v352_v38 = vpop.f32.mrf.mxu2 }
 0x3e2   :  { %v353_v39 = vadd.f32 %v352_v38, %v2226_v37 }
 0x3e4   :  { %v377_v40 = vsel %vm358_vm15, %v353_v39, -inf }
 0x3e5   :  { %378 = vmax.xlane.f32.xlu0 %v377_v40 }
 0x3e9   :  { %v355_v46 = vpop.f32.mrf.mxu2 }
 0x3ea   :  { %v356_v47 = vadd.f32 %v355_v46, %v2233_v45  ;;  %v1884_v46 = vpack.i.bf16 %v2155_v14, %v2159_v15 }
 0x3ec   :  { %v380_v50 = vsel %vm358_vm15, %v356_v47, -inf }
 0x3f9   :  { %v282_v11 = vpop.f32.mrf.mxu3 }
 0x3fa   :  { %v283_v43 = vadd.f32 %v282_v11, %v2226_v37 }
 0x3fc   :  { %v365_v44 = vsel %vm358_vm15, %v283_v43, -inf }
 0x3fd   :  { %366 = vmax.xlane.f32.xlu2 %v365_v44  ;;  %v1874_v44 = vpack.i.bf16 %v2187_v21, %v2175_v17 }
 0x401   :  { %v285_v48 = vpop.f32.mrf.mxu3 }
 0x402   :  { %v286_v49 = vadd.f32 %v285_v48, %v2233_v45 }
 0x404   :  { %v368_v51 = vsel %vm358_vm15, %v286_v49, -inf }
 0x405   :  { %381 = vmax.xlane.f32.xlu2 %v380_v50  ;;  %369 = vmax.xlane.f32.xlu0 %v368_v51 }
 0x407   :  { %v247_v12 = vpop.f32.mrf.mxu0  ;;  %v317_v52 = vpop.f32.mrf.mxu1 }
 0x408   :  { %v2240_v53 = vadd.f32 %v247_v12, %v2226_v37  ;;  %v318_v54 = vadd.f32 %v317_v52, %v2226_v37 }
 0x40a   :  { %v371_v55 = vsel %vm358_vm15, %v318_v54, -inf  ;;  %v359_v56 = vsel %vm358_vm15, %v2240_v53, -inf }
 0x40b   :  { %372 = vmax.xlane.f32.xlu1 %v371_v55 }
 0x40d   :  { %360 = vmax.xlane.f32.xlu2 %v359_v56 }
 0x40f   :  { %v250_v57 = vpop.f32.mrf.mxu0  ;;  %v320_v59 = vpop.f32.mrf.mxu1 }
 0x410   :  { %v2247_v60 = vadd.f32 %v250_v57, %v2233_v45  ;;  %v321_v61 = vadd.f32 %v320_v59, %v2233_v45 }
 0x412   :  { %v362_v62 = vsel %vm358_vm15, %v2247_v60, -inf  ;;  %v374_v63 = vsel %vm358_vm15, %v321_v61, -inf }
 0x413   :  { %363 = vmax.xlane.f32.xlu0 %v362_v62  ;;  %375 = vmax.xlane.f32.xlu1 %v374_v63 }
 0x458   :  { %v379_v0 = vpop.xlane.xlu0 %378 }
 0x459   :  { %v389_v1 = vsub.f32 %v353_v39, %v379_v0 }
 0x45b   :  { %v403_v2 = vmul.f32 1.442695, %v389_v1 }
 0x45d   :  { %1918 = vpow2.f32 %v403_v2 }
 0x463   :  { %v2253_v3 = vpop.eup %1918 }
 0x464   :  { %v425_v4 = vsel %vm358_vm15, %v2253_v3, 0.0 }
 0x465   :  { %426 = vadd.xlane.f32.xlu1 %v425_v4 }
 0x470   :  { %v367_v5 = vpop.xlane.xlu2 %366 }
 0x471   :  { %v385_v6 = vsub.f32 %v283_v43, %v367_v5  ;;  %v1869_v43 = vpack.i.bf16 %v2171_v16, %v2177_v18 }
 0x473   :  { %v395_v7 = vmul.f32 1.442695, %v385_v6 }
 0x475   :  { %1920 = vpow2.f32 %v395_v7 }
 0x478   :  { %v382_v8 = vpop.xlane.xlu2 %381  ;;  %v370_v9 = vpop.xlane.xlu0 %369 }
 0x479   :  { %v390_v10 = vsub.f32 %v356_v47, %v382_v8  ;;  %v386_v13 = vsub.f32 %v286_v49, %v370_v9  ;;  %v1879_v47 = vpack.i.bf16 %v2193_v22, %v2183_v19 }
 0x47b   :  { %v2257_v23 = vpop.eup %1920  ;;  %v405_v25 = vmul.f32 1.442695, %v390_v10  ;;  %v397_v26 = vmul.f32 1.442695, %v386_v13 }
 0x47c   :  { %v413_v27 = vsel %vm358_vm15, %v2257_v23, 0.0 }
 0x47d   :  { %1922 = vpow2.f32 %v405_v25  ;;  %414 = vadd.xlane.f32.xlu2 %v413_v27 }
 0x47e   :  { %1924 = vpow2.f32 %v397_v26  ;;  %v373_v28 = vpop.xlane.xlu1 %372 }
 0x47f   :  { %v387_v29 = vsub.f32 %v318_v54, %v373_v28 }
 0x480   :  { %v361_v48 = vpop.xlane.xlu2 %360 }
 0x481   :  { %v399_v30 = vmul.f32 1.442695, %v387_v29  ;;  %v383_v16 = vsub.f32 %v2240_v53, %v361_v48 }
 0x483   :  { %v2261_v31 = vpop.eup %1922  ;;  %1926 = vpow2.f32 %v399_v30  ;;  %v391_v18 = vmul.f32 1.442695, %v383_v16 }
 0x484   :  { %v2263_v33 = vpop.eup %1924  ;;  %v428_v34 = vsel %vm358_vm15, %v2261_v31, 0.0 }
 0x485   :  { %429 = vadd.xlane.f32.xlu1 %v428_v34  ;;  %v416_v35 = vsel %vm358_vm15, %v2263_v33, 0.0 }
 0x486   :  { %417 = vadd.xlane.f32.xlu2 %v416_v35  ;;  %v376_v36 = vpop.xlane.xlu1 %375  ;;  %v364_v17 = vpop.xlane.xlu0 %363 }
 0x487   :  { %v388_v38 = vsub.f32 %v321_v61, %v376_v36  ;;  %v384_v21 = vsub.f32 %v2247_v60, %v364_v17 }
 0x489   :  { %v2269_v39 = vpop.eup %1926  ;;  %v401_v40 = vmul.f32 1.442695, %v388_v38  ;;  %v393_v49 = vmul.f32 1.442695, %v384_v21 }
 0x48a   :  { %v419_v41 = vsel %vm358_vm15, %v2269_v39, 0.0 }
 0x48b   :  { %1928 = vpow2.f32 %v401_v40  ;;  %420 = vadd.xlane.f32.xlu0 %v419_v41 }
 0x48c   :  { %1930 = vpow2.f32 %v391_v18 }
 0x48d   :  { %1932 = vpow2.f32 %v393_v49 }
 0x491   :  { %v2273_v42 = vpop.eup %1928 }
 0x492   :  { %v422_v11 = vsel %vm358_vm15, %v2273_v42, 0.0  ;;  %v2291_v50 = vpop.eup %1930 }
 0x493   :  { %423 = vadd.xlane.f32.xlu0 %v422_v11  ;;  %v407_v14 = vsel %vm358_vm15, %v2291_v50, 0.0  ;;  %v2295_v15 = vpop.eup %1932 }
 0x494   :  { %v410_v19 = vsel %vm358_vm15, %v2295_v15, 0.0 }
 0x49e   :  { %1875 = vrot.lane.b32.xlu2 %v1874_v44, %s2006_s20  ;;  %1870 = vrot.lane.b32.xlu1 %v1869_v43, %s2006_s20 }
 0x4a6   :  { %1885 = vrot.lane.b32.xlu2 %v1884_v46, %s2006_s20 }
 0x4a7   :  { %1880 = vrot.lane.b32.xlu0 %v1879_v47, %s2006_s20 }
 0x4c8   :  { %408 = vadd.xlane.f32.xlu1 %v407_v14 }
 0x4d1   :  { %411 = vadd.xlane.f32.xlu0 %v410_v19 }
 0x4d8   :  { %v427_v22 = vpop.xlane.xlu1 %426 }
 0x4d9   :  { %1934 = vrcp.f32 %v427_v22  ;;  %v532_v9 = vand.u32 2147483648, %v427_v22  ;;  %vm526_vm5 = vweird.f32 %v427_v22  ;;  %v530_v25 = vand.u32 2147483647, %v427_v22 }
 0x4db   :  { %v533_v36 = vor.u32 1.1754944e-38, %v532_v9  ;;  %vm531_vm7 = vcmp.eq.f32.partialorder %v530_v25, 8.507059e+37 }
 0x4df   :  { %v1935_v12 = vpop.eup %1934 }
 0x4e0   :  { %v522_v54 = vmul.f32 %v1935_v12, %v427_v22  ;;  %vm527_vm4 = vweird.f32 %v1935_v12 }
 0x4e1   :  { %vm528_vm6 = vmor %vm526_vm5, %vm527_vm4 }
 0x4e2   :  { %v523_v56 = vsub.f32 1.0, %v522_v54 }
 0x4e4   :  { %v524_v63 = vmul.f32 %v1935_v12, %v523_v56 }
 0x4e6   :  { %v525_v6 = vadd.f32 %v1935_v12, %v524_v63 }
 0x4e8   :  { %v529_v34 = vsel %vm528_vm6, %v1935_v12, %v525_v6 }
 0x4e9   :  { %v534_v11 = vsel %vm531_vm7, %v533_v36, %v529_v34 }
 0x4f0   :  { %v2299_v51 = vpop.xlane.xlu2 %414 }
 0x4f1   :  { %1936 = vrcp.f32 %v2299_v51  ;;  %vm466_vm8 = vweird.f32 %v2299_v51  ;;  %v470_v44 = vand.u32 2147483647, %v2299_v51  ;;  %v472_v17 = vand.u32 2147483648, %v2299_v51 }
 0x4f3   :  { %vm471_vm4 = vcmp.eq.f32.partialorder %v470_v44, 8.507059e+37 }
 0x4f7   :  { %v2310_v57 = vpop.eup %1936 }
 0x4f8   :  { %v2303_v53 = vpop.xlane.xlu1 %429  ;;  %v462_v0 = vmul.f32 %v2310_v57, %v2299_v51  ;;  %vm467_vm9 = vweird.f32 %v2310_v57  ;;  %v535_v51 = vmul.f32 %v2253_v3, %v534_v11  ;;  %v473_v3 = vor.u32 1.1754944e-38, %v472_v17 }
 0x4f9   :  { %v2301_v52 = vpop.xlane.xlu2 %417  ;;  %1938 = vrcp.f32 %v2303_v53  ;;  %vm2349_vm13 = vmor %vm466_vm8, %vm467_vm9  ;;  %v547_v19 = vand.u32 2147483648, %v2303_v53  ;;  %vm541_vm0 = vweird.f32 %v2303_v53  ;;  %v545_v56 = vand.u32 2147483647, %v2303_v53 }
 0x4fa   :  { %v463_v7 = vsub.f32 1.0, %v462_v0  ;;  %vm481_vm5 = vweird.f32 %v2301_v52 }
 0x4fb   :  { %v548_v0 = vor.u32 1.1754944e-38, %v547_v19  ;;  %vm546_vm7 = vcmp.eq.f32.partialorder %v545_v56, 8.507059e+37 }
 0x4fc   :  { %v464_v28 = vmul.f32 %v2310_v57, %v463_v7 }
 0x4fe   :  { %v2307_v55 = vpop.xlane.xlu0 %420  ;;  %v465_v43 = vadd.f32 %v2310_v57, %v464_v28 }
 0x4ff   :  { %1940 = vrcp.f32 %v2307_v55  ;;  %v2312_v62 = vpop.eup %1938  ;;  %v502_v21 = vand.u32 2147483648, %v2307_v55  ;;  %vm496_vm14 = vweird.f32 %v2307_v55  ;;  %v500_v22 = vand.u32 2147483647, %v2307_v55 }
 0x500   :  { %1942 = vrcp.f32 %v2301_v52  ;;  %v537_v2 = vmul.f32 %v2312_v62, %v2303_v53  ;;  %vm542_vm12 = vweird.f32 %v2312_v62 }
 0x501   :  { %v1876_v59 = vpop.permute.xlu2 %1875  ;;  %vm2373_vm2 = vmor %vm541_vm0, %vm542_vm12  ;;  %v503_v53 = vor.u32 1.1754944e-38, %v502_v21  ;;  %vm501_vm6 = vcmp.eq.f32.partialorder %v500_v22, 8.507059e+37 }
 0x502   :  { %v1878_v60 = vunpack.i.h.bf16 %v1876_v59  ;;  %v1877_v61 = vunpack.i.l.bf16 %v1876_v59  ;;  %v538_v26 = vsub.f32 1.0, %v537_v2  ;;  %v469_v59 = vsel %vm2349_vm13, %v2310_v57, %v465_v43 }
 0x503   :  { %v474_v2 = vsel %vm471_vm4, %v473_v3, %v469_v59  ;;  %v725_v3 = vld [vmem:[%s2974_s4 + $0x18] sm:$0xff] }
 0x504   :  { %612 = vmatpush.msra.mxu0 %v1877_v61  ;;  %647 = vmatpush.msra.mxu1 %v1878_v60  ;;  %v539_v40 = vmul.f32 %v2312_v62, %v538_v26  ;;  %v485_v26 = vand.u32 2147483647, %v2301_v52 }
 0x505   :  { %v2317_v1 = vpop.eup %1940 }
 0x506   :  { %v492_v4 = vmul.f32 %v2317_v1, %v2307_v55  ;;  %v2323_v5 = vpop.xlane.xlu0 %423  ;;  %v2326_v8 = vpop.eup %1942  ;;  %vm497_vm10 = vweird.f32 %v2317_v1  ;;  %v540_v49 = vadd.f32 %v2312_v62, %v539_v40 }
 0x507   :  { %1944 = vrcp.f32 %v2323_v5  ;;  %v477_v29 = vmul.f32 %v2326_v8, %v2301_v52  ;;  %vm2357_vm1 = vmor %vm496_vm14, %vm497_vm10  ;;  %vm482_vm8 = vweird.f32 %v2326_v8  ;;  %vm511_vm10 = vweird.f32 %v2323_v5 }
 0x508   :  { %v493_v10 = vsub.f32 1.0, %v492_v4  ;;  %v544_v57 = vsel %vm2373_vm2, %v2312_v62, %v540_v49  ;;  %v517_v62 = vand.u32 2147483648, %v2323_v5  ;;  %vm2394_vm12 = vmor %vm481_vm5, %vm482_vm8  ;;  %vm486_vm14 = vcmp.eq.f32.partialorder %v485_v26, 8.507059e+37 }
 0x509   :  { %v1886_v13 = vpop.permute.xlu2 %1885  ;;  %v478_v46 = vsub.f32 1.0, %v477_v29  ;;  %v549_v7 = vsel %vm546_vm7, %v548_v0, %v544_v57  ;;  %v723_v57 = vld [vmem:[%s2974_s4 + $0x8] sm:$0xff]  ;;  %v722_v0 = vld [vmem:[%s2974_s4] sm:$0xff] }
 0x50a   :  { %v1887_v27 = vunpack.i.l.bf16 %v1886_v13  ;;  %v1888_v30 = vunpack.i.h.bf16 %v1886_v13  ;;  %v494_v38 = vmul.f32 %v2317_v1, %v493_v10  ;;  %v550_v34 = vmul.f32 %v2261_v31, %v549_v7 }
 0x50b   :  { %v479_v60 = vmul.f32 %v2326_v8, %v478_v46  ;;  %v518_v36 = vor.u32 1.1754944e-38, %v517_v62 }
 0x50c   :  { %577 = vmatpush.msrb.mxu3 %v1887_v27  ;;  %v495_v48 = vadd.f32 %v2317_v1, %v494_v38  ;;  %v475_v27 = vmul.f32 %v2257_v23, %v474_v2 }
 0x50d   :  { %v2331_v35 = vpop.eup %1944  ;;  %v480_v9 = vadd.f32 %v2326_v8, %v479_v60 }
 0x50e   :  { %v507_v41 = vmul.f32 %v2331_v35, %v2323_v5  ;;  %578 = vmatpush.msrb.mxu3 %v1888_v30  ;;  %v499_v55 = vsel %vm2357_vm1, %v2317_v1, %v495_v48  ;;  %v487_v1 = vand.u32 2147483648, %v2301_v52  ;;  %vm512_vm9 = vweird.f32 %v2331_v35 }
 0x50f   :  { %v504_v4 = vsel %vm501_vm6, %v503_v53, %v499_v55  ;;  %v515_v30 = vand.u32 2147483647, %v2323_v5  ;;  %vm513_vm13 = vmor %vm511_vm10, %vm512_vm9  ;;  %v484_v23 = vsel %vm2394_vm12, %v2326_v8, %v480_v9  ;;  %v724_v53 = vld [vmem:[%s2974_s4 + $0x10] sm:$0xff]  ;;  %vm719_vm10 = vcmask 195584  }
 0x510   :  { %v1871_v47 = vpop.permute.xlu1 %1870  ;;  %v508_v16 = vsub.f32 1.0, %v507_v41  ;;  %v505_v28 = vmul.f32 %v2269_v39, %v504_v4  ;;  %v488_v52 = vor.u32 1.1754944e-38, %v487_v1  ;;  %745 = vmatpush.msra.mxu3 %v725_v3  ;;  %v857_v3 = vld [vmem:[%s2977_s6 + $0x50] sm:$0xff] }
 0x511   :  { %v1872_v18 = vunpack.i.l.bf16 %v1871_v47  ;;  %v1873_v12 = vunpack.i.h.bf16 %v1871_v47  ;;  %vm516_vm0 = vcmp.eq.f32.partialorder %v515_v30, 8.507059e+37  ;;  %v726_v30 = vperm.slane %v2149_v58, 4 }
 0x512   :  { %v509_v61 = vmul.f32 %v2331_v35, %v508_v16  ;;  %v489_v5 = vsel %vm486_vm14, %v488_v52, %v484_v23  ;;  %746 = vmatpush.msra.mxu3 %v724_v53 }
 0x513   :  { %682 = vmatpush.msrb.mxu2 %v1872_v18  ;;  %v490_v31 = vmul.f32 %v2263_v33, %v489_v5 }
 0x514   :  { %v510_v10 = vadd.f32 %v2331_v35, %v509_v61  ;;  %747 = vmatpush.msra.mxu3 %v723_v57  ;;  %v805_v57 = vperm.slane %v2149_v58, 3 }
 0x515   :  { %683 = vmatpush.msrb.mxu2 %v1873_v12 }
 0x516   :  { %1788 = vmatmul.msk.f32.vlgmr.msrb.gmra.mxu2 %vm358_vm15, %v535_v51  ;;  %v514_v39 = vsel %vm513_vm13, %v2331_v35, %v510_v10  ;;  %748 = vmatpush.msra.mxu3 %v722_v0  ;;  %v856_v0 = vld [vmem:[%s2977_s6 + $0x48] sm:$0xff] }
 0x517   :  { %v519_v38 = vsel %vm516_vm0, %v518_v36, %v514_v39 }
 0x518   :  { %v520_v40 = vmul.f32 %v2273_v42, %v519_v38 }
 0x519   :  { %v1881_v6 = vpop.permute.xlu0 %1880 }
 0x51a   :  { %v1883_v13 = vunpack.i.h.bf16 %v1881_v6  ;;  %v1882_v25 = vunpack.i.l.bf16 %v1881_v6 }
 0x51c   :  { %613 = vmatpush.msra.mxu0 %v1882_v25  ;;  %648 = vmatpush.msra.mxu1 %v1883_v13 }
 0x51d   :  { %1784 = vmatmul.msk.f32.vlgmr.msra.gmra.mxu0 %vm358_vm15, %v475_v27  ;;  %1786 = vmatmul.msk.f32.vlgmr.msra.gmra.mxu1 %vm358_vm15, %v505_v28 }
 0x51e   :  { %1789 = vmatmul.msk.f32.gmra.mxu2 %vm358_vm15, %v550_v34 }
 0x525   :  { %1785 = vmatmul.msk.f32.gmra.mxu0 %vm358_vm15, %v490_v31  ;;  %1787 = vmatmul.msk.f32.gmra.mxu1 %vm358_vm15, %v520_v40 }
 0x53b   :  { %v409_v41 = vpop.xlane.xlu1 %408 }
 0x53c   :  { %1946 = vrcp.f32 %v409_v41  ;;  %v442_v44 = vand.u32 2147483648, %v409_v41  ;;  %v440_v47 = vand.u32 2147483647, %v409_v41  ;;  %vm436_vm2 = vweird.f32 %v409_v41 }
 0x53e   :  { %v443_v33 = vor.u32 1.1754944e-38, %v442_v44  ;;  %vm441_vm5 = vcmp.eq.f32.partialorder %v440_v47, 8.507059e+37  ;;  %v811_v47 = vld [vmem:[%s2976_s5 + $0x18] sm:$0xff] }
 0x53f   :  { %834 = vmatpush.msrb.mxu0 %v811_v47 }
 0x542   :  { %v1947_v8 = vpop.eup %1946 }
 0x543   :  { %v432_v35 = vmul.f32 %v1947_v8, %v409_v41  ;;  %vm437_vm1 = vweird.f32 %v1947_v8 }
 0x544   :  { %v412_v11 = vpop.xlane.xlu0 %411  ;;  %vm438_vm4 = vmor %vm436_vm2, %vm437_vm1 }
 0x545   :  { %v433_v43 = vsub.f32 1.0, %v432_v35  ;;  %1948 = vrcp.f32 %v412_v11  ;;  %v457_v14 = vand.u32 2147483648, %v412_v11  ;;  %v455_v22 = vand.u32 2147483647, %v412_v11 }
 0x546   :  { %vm451_vm7 = vweird.f32 %v412_v11 }
 0x547   :  { %v434_v46 = vmul.f32 %v1947_v8, %v433_v43  ;;  %v458_v54 = vor.u32 1.1754944e-38, %v457_v14  ;;  %vm456_vm9 = vcmp.eq.f32.partialorder %v455_v22, 8.507059e+37  ;;  %v861_v22 = vld [vmem:[%s2977_s6 + $0x70] sm:$0xff] }
 0x549   :  { %v435_v48 = vadd.f32 %v1947_v8, %v434_v46 }
 0x54b   :  { %v1949_v42 = vpop.eup %1948  ;;  %v439_v16 = vsel %vm438_vm4, %v1947_v8, %v435_v48  ;;  %v810_v48 = vld [vmem:[%s2976_s5 + $0x10] sm:$0xff] }
 0x54c   :  { %v447_v18 = vmul.f32 %v1949_v42, %v412_v11  ;;  %v444_v17 = vsel %vm441_vm5, %v443_v33, %v439_v16  ;;  %vm452_vm6 = vweird.f32 %v1949_v42  ;;  %835 = vmatpush.msrb.mxu0 %v810_v48  ;;  %v809_v33 = vld [vmem:[%s2976_s5 + $0x8] sm:$0xff] }
 0x54d   :  { %v445_v21 = vmul.f32 %v2291_v50, %v444_v17  ;;  %vm453_vm8 = vmor %vm451_vm7, %vm452_vm6 }
 0x54e   :  { %v448_v49 = vsub.f32 1.0, %v447_v18  ;;  %836 = vmatpush.msrb.mxu0 %v809_v33 }
 0x54f   :  { %1782 = vmatmul.msk.f32.vlgmr.msrb.gmra.mxu3 %vm358_vm15, %v445_v21 }
 0x550   :  { %v449_v19 = vmul.f32 %v1949_v42, %v448_v49 }
 0x552   :  { %v450_v12 = vadd.f32 %v1949_v42, %v449_v19  ;;  %v862_v19 = vld [vmem:[%s2977_s6 + $0x78] sm:$0xff] }
 0x553   :  { %863 = vmatpush.msrb.mxu1 %v862_v19 }
 0x554   :  { %v454_v51 = vsel %vm453_vm8, %v1949_v42, %v450_v12  ;;  %v808_v42 = vld [vmem:[%s2976_s5] sm:$0xff] }
 0x555   :  { %v459_v56 = vsel %vm456_vm9, %v458_v54, %v454_v51  ;;  %837 = vmatpush.msrb.mxu0 %v808_v42  ;;  %v860_v54 = vld [vmem:[%s2977_s6 + $0x68] sm:$0xff]  ;;  %864 = vmatpush.msrb.mxu1 %v861_v22 }
 0x556   :  { %v460_v59 = vmul.f32 %v2295_v15, %v459_v56 }
 0x557   :  { %865 = vmatpush.msrb.mxu1 %v860_v54  ;;  %v1798_v54 = vld [vmem:[%s2972_s3 + $0x38] sm:$0xff] }
 0x558   :  { %1783 = vmatmul.msk.f32.gmra.mxu3 %vm358_vm15, %v460_v59  ;;  %966 = vmatpush.msra.mxu2 %v1798_v54 }
 0x599   :  { %v685_v60 = vpop.f32.mrf.mxu2 }
 0x59a   :  { %v650_v50 = vpop.f32.mrf.mxu1  ;;  %v615_v61 = vpop.f32.mrf.mxu0 }
 0x59b   :  { %701 = vrot.lane.b32.xlu2 %v650_v50, %s2007_s21 }
 0x5a1   :  { %v688_v55 = vpop.f32.mrf.mxu2 }
 0x5a2   :  { %711 = vrot.lane.b32.xlu0 %v688_v55, %s2008_s22  ;;  %v653_v63 = vpop.f32.mrf.mxu1  ;;  %v618_v15 = vpop.f32.mrf.mxu0 }
 0x5a3   :  { %703 = vrot.lane.b32.xlu1 %v653_v63, %s2007_s21  ;;  %693 = vrot.lane.b32.xlu2 %v615_v61, %s2009_s0  ;;  %v858_v61 = vld [vmem:[%s2977_s6 + $0x58] sm:$0xff]  ;;  %v802_v63 = vperm.slane %v2149_v58, 2 }
 0x5ab   :  { %709 = vrot.lane.b32.xlu2 %v685_v60, %s2008_s22  ;;  %v859_v60 = vld [vmem:[%s2977_s6 + $0x60] sm:$0xff] }
 0x5ac   :  { %866 = vmatpush.msrb.mxu1 %v859_v60 }
 0x5ae   :  { %867 = vmatpush.msrb.mxu1 %v858_v61 }
 0x5b0   :  { %868 = vmatpush.msrb.mxu1 %v857_v3 }
 0x5b2   :  { %869 = vmatpush.msrb.mxu1 %v856_v0 }
 0x5b3   :  { %695 = vrot.lane.b32.xlu2 %v618_v15, %s2009_s0 }
 0x5d2   :  { %v580_v4 = vpop.f32.mrf.mxu3 }
 0x5db   :  { %v583_v13 = vpop.f32.mrf.mxu3 }
 0x5f5   :  { %v702_v1 = vpop.permute.xlu2 %701 }
 0x5fd   :  { %v694_v2 = vpop.permute.xlu2 %693 }
 0x5fe   :  { %v715_v6 = vsel %vm221_vm11, %v580_v4, %v694_v2  ;;  %v855_v2 = vld [vmem:[%s2977_s6 + $0x40] sm:$0xff] }
 0x5ff   :  { %v717_v7 = vsel %vm358_vm15, %v715_v6, %v702_v1  ;;  %870 = vmatpush.msrb.mxu1 %v855_v2 }
 0x605   :  { %v710_v9 = vpop.permute.xlu2 %709 }
 0x606   :  { %v720_v10 = vsel %vm719_vm10, %v717_v7, %v710_v9  ;;  %v854_v7 = vld [vmem:[%s2977_s6 + $0x38] sm:$0xff] }
 0x607   :  { %1790 = vmatmul.msk.f32.vlgmr.msra.gmra.mxu3 %vm112_vm3, %v720_v10  ;;  %v853_v10 = vld [vmem:[%s2977_s6 + $0x30] sm:$0xff]  ;;  %871 = vmatpush.msrb.mxu1 %v854_v7 }
 0x609   :  { %872 = vmatpush.msrb.mxu1 %v853_v10 }
 0x60d   :  { %v696_v62 = vpop.permute.xlu2 %695 }
 0x60e   :  { %v716_v25 = vsel %vm221_vm11, %v583_v13, %v696_v62  ;;  %v852_v13 = vld [vmem:[%s2977_s6 + $0x28] sm:$0xff] }
 0x60f   :  { %873 = vmatpush.msrb.mxu1 %v852_v13 }
 0x614   :  { %v712_v27 = vpop.permute.xlu0 %711 }
 0x615   :  { %v704_v26 = vpop.permute.xlu1 %703 }
 0x616   :  { %v718_v28 = vsel %vm358_vm15, %v716_v25, %v704_v26  ;;  %v851_v26 = vld [vmem:[%s2977_s6 + $0x20] sm:$0xff] }
 0x617   :  { %v721_v29 = vsel %vm719_vm10, %v718_v28, %v712_v27  ;;  %v850_v28 = vld [vmem:[%s2977_s6 + $0x18] sm:$0xff]  ;;  %874 = vmatpush.msrb.mxu1 %v851_v26 }
 0x618   :  { %1791 = vmatmul.msk.f32.gmra.mxu3 %vm112_vm3, %v721_v29 }
 0x619   :  { %875 = vmatpush.msrb.mxu1 %v850_v28 }
 0x68a   :  { %v750_v34 = vpop.f32.mrf.mxu3 }
 0x68b   :  { %v751_v23 = vadd.f32 %v750_v34, %v726_v30 }
 0x68d   :  { %v2443_v39 = vadd.f32 %v751_v23, %v2113_v20 }
 0x68f   :  { %v758_v52 = vsel %vm112_vm3, %v2443_v39, 0.0 }
 0x690   :  { %759 = vadd.xlane.f32.xlu2 %v758_v52 }
 0x69b   :  { %v753_v36 = vpop.f32.mrf.mxu3 }
 0x69c   :  { %v754_v5 = vadd.f32 %v753_v36, %v726_v30  ;;  %v849_v36 = vld [vmem:[%s2977_s6 + $0x10] sm:$0xff] }
 0x69d   :  { %876 = vmatpush.msrb.mxu1 %v849_v36 }
 0x69e   :  { %v2448_v38 = vadd.f32 %v754_v5, %v2120_v24  ;;  %v848_v5 = vld [vmem:[%s2977_s6 + $0x8] sm:$0xff] }
 0x69f   :  { %877 = vmatpush.msrb.mxu1 %v848_v5 }
 0x6a0   :  { %v761_v31 = vsel %vm112_vm3, %v2448_v38, 0.0 }
 0x6a1   :  { %762 = vadd.xlane.f32.xlu0 %v761_v31  ;;  %v847_v31 = vld [vmem:[%s2977_s6] sm:$0xff] }
 0x6a2   :  { %878 = vmatpush.msrb.mxu1 %v847_v31 }
 0x703   :  { %v760_v40 = vpop.xlane.xlu2 %759 }
 0x704   :  { %v764_v41 = vmul.f32 %v760_v40, %v2124_v32  ;;  %v1909_v40 = vld [vmem:[%s2975_s8] ss:$0 sm:$0xff] }
 0x706   :  { %v766_v8 = vsub.f32 %v2443_v39, %v764_v41 }
 0x708   :  { %v768_v20 = vmul.f32 %v766_v8, %v766_v8 }
 0x70a   :  { %v770_v35 = vsel %vm112_vm3, %v768_v20, 0.0 }
 0x70b   :  { %771 = vadd.xlane.f32.xlu1 %v770_v35 }
 0x714   :  { %v763_v11 = vpop.xlane.xlu0 %762 }
 0x715   :  { %v765_v43 = vmul.f32 %v763_v11, %v2124_v32 }
 0x717   :  { %v2457_v44 = vsub.f32 %v2448_v38, %v765_v43 }
 0x719   :  { %v769_v24 = vmul.f32 %v2457_v44, %v2457_v44 }
 0x71b   :  { %v773_v46 = vsel %vm112_vm3, %v769_v24, 0.0 }
 0x71c   :  { %774 = vadd.xlane.f32.xlu2 %v773_v46 }
 0x77e   :  { %v772_v16 = vpop.xlane.xlu1 %771 }
 0x77f   :  { %v776_v18 = vmul.f32 %v772_v16, %v2124_v32 }
 0x781   :  { %v778_v17 = vadd.f32 1e-05, %v776_v18 }
 0x783   :  { %1950 = vrsqrt.f32 %v778_v17  ;;  %vm786_vm13 = vweird.f32 %v778_v17 }
 0x789   :  { %v1951_v21 = vpop.eup %1950 }
 0x78a   :  { %v781_v49 = vmul.f32 %v1951_v21, %v778_v17  ;;  %vm787_vm12 = vweird.f32 %v1951_v21 }
 0x78b   :  { %vm788_vm14 = vmor %vm786_vm13, %vm787_vm12 }
 0x78c   :  { %v782_v14 = vmul.f32 %v1951_v21, %v781_v49 }
 0x78e   :  { %v783_v12 = vmul.f32 0.5, %v782_v14 }
 0x78f   :  { %v775_v51 = vpop.xlane.xlu2 %774 }
 0x790   :  { %v784_v56 = vsub.f32 1.5, %v783_v12  ;;  %v777_v59 = vmul.f32 %v775_v51, %v2124_v32  ;;  %v1797_v51 = vld [vmem:[%s2972_s3 + $0x30] sm:$0xff] }
 0x791   :  { %967 = vmatpush.msra.mxu2 %v1797_v51 }
 0x792   :  { %v785_v50 = vmul.f32 %v1951_v21, %v784_v56  ;;  %v779_v55 = vadd.f32 1e-05, %v777_v59  ;;  %v1796_v56 = vld [vmem:[%s2972_s3 + $0x28] sm:$0xff]  ;;  %v1795_v59 = vld [vmem:[%s2972_s3 + $0x20] sm:$0xff] }
 0x793   :  { %968 = vmatpush.msra.mxu2 %v1796_v56 }
 0x794   :  { %v789_v15 = vsel %vm788_vm14, %v1951_v21, %v785_v50  ;;  %1952 = vrsqrt.f32 %v779_v55  ;;  %vm796_vm1 = vweird.f32 %v779_v55 }
 0x795   :  { %v800_v53 = vmul.f32 %v789_v15, %v766_v8  ;;  %969 = vmatpush.msra.mxu2 %v1795_v59 }
 0x797   :  { %v803_v1 = vmul.f32 %v802_v63, %v800_v53 }
 0x799   :  { %v806_v4 = vadd.f32 %v805_v57, %v803_v1 }
 0x79a   :  { %v1953_v6 = vpop.eup %1952 }
 0x79b   :  { %v791_v9 = vmul.f32 %v1953_v6, %v779_v55  ;;  %1792 = vmatmul.msk.f32.vlgmr.msrb.gmra.mxu0 %vm112_vm3, %v806_v4  ;;  %vm797_vm0 = vweird.f32 %v1953_v6 }
 0x79c   :  { %vm798_vm2 = vmor %vm796_vm1, %vm797_vm0 }
 0x79d   :  { %v792_v62 = vmul.f32 %v1953_v6, %v791_v9 }
 0x79f   :  { %v793_v25 = vmul.f32 0.5, %v792_v62 }
 0x7a1   :  { %v794_v27 = vsub.f32 1.5, %v793_v25 }
 0x7a3   :  { %v795_v29 = vmul.f32 %v1953_v6, %v794_v27 }
 0x7a5   :  { %v799_v30 = vsel %vm798_vm2, %v1953_v6, %v795_v29 }
 0x7a6   :  { %v801_v34 = vmul.f32 %v799_v30, %v2457_v44  ;;  %v888_v44 = vperm.slane %v2149_v58, 5 }
 0x7a8   :  { %v804_v23 = vmul.f32 %v802_v63, %v801_v34 }
 0x7aa   :  { %v807_v52 = vadd.f32 %v805_v57, %v804_v23  ;;  %v2565_v57 = vld [vmem:[%s2973_s7 + $0x8] sm:$0x3f] }
 0x7ab   :  { %v937_v6 = vperm.slane %v2565_v57, 0  ;;  %v940_v10 = vperm.slane %v2565_v57, 1 }
 0x7ac   :  { %1793 = vmatmul.msk.f32.gmra.mxu0 %vm112_vm3, %v807_v52 }
 0x818   :  { %v839_v41 = vpop.f32.mrf.mxu0 }
 0x819   :  { %v840_v8 = vadd.f32 %v1909_v40, %v839_v41 }
 0x81b   :  { %v845_v20 = vmax.f32 %v840_v8, 0.0 }
 0x81d   :  { %879 = vmatmul.f32.vlgmr.msrb.gmra.mxu1 %v845_v20 }
 0x829   :  { %v842_v35 = vpop.f32.mrf.mxu0 }
 0x82a   :  { %v843_v11 = vadd.f32 %v1909_v40, %v842_v35 }
 0x82c   :  { %v846_v43 = vmax.f32 %v843_v11, 0.0 }
 0x82e   :  { %882 = vmatmul.f32.gmra.mxu1 %v846_v43 }
 0x89a   :  { %v880_v24 = vpop.f32.mrf.mxu1 }
 0x89b   :  { %v886_v46 = vadd.f32 %v880_v24, %v2443_v39 }
 0x89d   :  { %v2534_v47 = vadd.f32 %v888_v44, %v886_v46 }
 0x89f   :  { %v893_v48 = vsel %vm112_vm3, %v2534_v47, 0.0 }
 0x8a0   :  { %894 = vadd.xlane.f32.xlu2 %v893_v48 }
 0x8ab   :  { %v883_v33 = vpop.f32.mrf.mxu1 }
 0x8ac   :  { %v887_v42 = vadd.f32 %v883_v33, %v2448_v38 }
 0x8ae   :  { %v2539_v16 = vadd.f32 %v888_v44, %v887_v42 }
 0x8b0   :  { %v896_v18 = vsel %vm112_vm3, %v2539_v16, 0.0 }
 0x8b1   :  { %897 = vadd.xlane.f32.xlu2 %v896_v18 }
 0x913   :  { %v895_v17 = vpop.xlane.xlu2 %894 }
 0x914   :  { %v899_v58 = vmul.f32 %v895_v17, %v2124_v32 }
 0x916   :  { %v901_v39 = vsub.f32 %v2534_v47, %v899_v58 }
 0x918   :  { %v903_v21 = vmul.f32 %v901_v39, %v901_v39 }
 0x91a   :  { %v905_v49 = vsel %vm112_vm3, %v903_v21, 0.0 }
 0x91b   :  { %906 = vadd.xlane.f32.xlu0 %v905_v49 }
 0x924   :  { %v898_v14 = vpop.xlane.xlu2 %897 }
 0x925   :  { %v900_v19 = vmul.f32 %v898_v14, %v2124_v32 }
 0x927   :  { %v902_v38 = vsub.f32 %v2539_v16, %v900_v19 }
 0x929   :  { %v904_v22 = vmul.f32 %v902_v38, %v902_v38 }
 0x92b   :  { %v908_v12 = vsel %vm112_vm3, %v904_v22, 0.0 }
 0x92c   :  { %909 = vadd.xlane.f32.xlu1 %v908_v12 }
 0x98e   :  { %v907_v60 = vpop.xlane.xlu0 %906 }
 0x98f   :  { %v911_v50 = vmul.f32 %v907_v60, %v2124_v32 }
 0x991   :  { %v913_v55 = vadd.f32 1e-05, %v911_v50 }
 0x993   :  { %1954 = vrsqrt.f32 %v913_v55  ;;  %vm921_vm5 = vweird.f32 %v913_v55 }
 0x999   :  { %v1955_v61 = vpop.eup %1954 }
 0x99a   :  { %v916_v63 = vmul.f32 %v1955_v61, %v913_v55  ;;  %vm922_vm4 = vweird.f32 %v1955_v61 }
 0x99b   :  { %vm923_vm6 = vmor %vm921_vm5, %vm922_vm4 }
 0x99c   :  { %v917_v15 = vmul.f32 %v1955_v61, %v916_v63 }
 0x99e   :  { %v918_v3 = vmul.f32 0.5, %v917_v15 }
 0x99f   :  { %v910_v53 = vpop.xlane.xlu1 %909 }
 0x9a0   :  { %v919_v0 = vsub.f32 1.5, %v918_v3  ;;  %v912_v1 = vmul.f32 %v910_v53, %v2124_v32 }
 0x9a2   :  { %v920_v2 = vmul.f32 %v1955_v61, %v919_v0  ;;  %v914_v4 = vadd.f32 1e-05, %v912_v1 }
 0x9a4   :  { %v924_v7 = vsel %vm923_vm6, %v1955_v61, %v920_v2  ;;  %1956 = vrsqrt.f32 %v914_v4  ;;  %vm931_vm8 = vweird.f32 %v914_v4 }
 0x9a5   :  { %v935_v9 = vmul.f32 %v924_v7, %v901_v39 }
 0x9a7   :  { %v938_v62 = vmul.f32 %v937_v6, %v935_v9 }
 0x9a9   :  { %v941_v13 = vadd.f32 %v940_v10, %v938_v62 }
 0x9aa   :  { %v1957_v25 = vpop.eup %1956 }
 0x9ab   :  { %v926_v26 = vmul.f32 %v1957_v25, %v914_v4  ;;  %1799 = vmatmul.msk.f32.vlgmr.msra.gmra.mxu2 %vm112_vm3, %v941_v13  ;;  %vm932_vm7 = vweird.f32 %v1957_v25 }
 0x9ac   :  { %vm933_vm9 = vmor %vm931_vm8, %vm932_vm7 }
 0x9ad   :  { %v927_v27 = vmul.f32 %v1957_v25, %v926_v26 }
 0x9af   :  { %v928_v28 = vmul.f32 0.5, %v927_v27 }
 0x9b1   :  { %v929_v29 = vsub.f32 1.5, %v928_v28 }
 0x9b3   :  { %v930_v30 = vmul.f32 %v1957_v25, %v929_v29 }
 0x9b5   :  { %v934_v34 = vsel %vm933_vm9, %v1957_v25, %v930_v30 }
 0x9b6   :  { %v936_v23 = vmul.f32 %v934_v34, %v902_v38 }
 0x9b8   :  { %v939_v52 = vmul.f32 %v937_v6, %v936_v23 }
 0x9ba   :  { %v942_v36 = vadd.f32 %v940_v10, %v939_v52 }
 0x9bc   :  { %1800 = vmatmul.msk.f32.gmra.mxu2 %vm112_vm3, %v942_v36 }
 0xa2e   :  { %v2572_v5 = vpop.f32.mrf.mxu2 }
 0xa2f   :  { %983 = vrot.lane.b32.xlu1 %v2572_v5, %s2003_s18 }
 0xa3f   :  { %v2576_v31 = vpop.f32.mrf.mxu2 }
 0xa40   :  { %993 = vrot.lane.b32.xlu1 %v2576_v31, %s2004_s19  ;;  %989 = vrot.lane.b32.xlu0 %v2576_v31, %s2001_s16 }
 0xa41   :  { %985 = vrot.lane.b32.xlu2 %v2576_v31, %s2003_s18 }
 0xa48   :  { %987 = vrot.lane.b32.xlu0 %v2572_v5, %s2001_s16 }
 0xa49   :  { %981 = vrot.lane.b32.xlu2 %v2576_v31, %s2002_s17 }
 0xa50   :  { %979 = vrot.lane.b32.xlu0 %v2572_v5, %s2002_s17 }
 0xa51   :  { %991 = vrot.lane.b32.xlu2 %v2572_v5, %s2004_s19 }
 0xa9b   :  { %v2592_v40 = vpop.permute.xlu2 %985 }
 0xa9c   :  { %1063 = vrot.lane.b32.xlu0 %v2592_v40, %s2004_s19 }
 0xaa1   :  { %v2596_v41 = vpop.permute.xlu1 %983 }
 0xaa2   :  { %1061 = vrot.lane.b32.xlu2 %v2596_v41, %s2004_s19 }
 0xaa3   :  { %v2600_v8 = vpop.permute.xlu2 %981 }
 0xaab   :  { %v992_v11 = vpop.permute.xlu2 %991 }
 0xab2   :  { %v2602_v20 = vpop.permute.xlu0 %989  ;;  %v994_v35 = vpop.permute.xlu1 %993 }
 0xab3   :  { %1098 = vrot.lane.b32.xlu1 %v2602_v20, %s2004_s19  ;;  %1801 = vmatpush.xpose.msk.msrb.mxu3 %vm221_vm11, %v994_v35 }
 0xab7   :  { %1802 = vmatpush.xpose.msk.msrb.mxu3 %vm221_vm11, %v992_v11 }
 0xaba   :  { %v2608_v43 = vpop.permute.xlu0 %987  ;;  %1803 = vmatmul.msk.f32.vlgmr.msrb.gmra.mxu3 %vm221_vm11, %v2572_v5 }
 0xabb   :  { %1096 = vrot.lane.b32.xlu0 %v2608_v43, %s2004_s19  ;;  %1028 = vrot.lane.b32.xlu1 %v2600_v8, %s2004_s19 }
 0xac2   :  { %v2616_v44 = vpop.permute.xlu0 %979  ;;  %1804 = vmatmul.msk.f32.gmra.mxu3 %vm221_vm11, %v2576_v31 }
 0xac3   :  { %1026 = vrot.lane.b32.xlu2 %v2616_v44, %s2004_s19 }
 0xafc   :  { %v1062_v46 = vpop.permute.xlu2 %1061 }
 0xb0e   :  { %v1064_v24 = vpop.permute.xlu0 %1063 }
 0xb0f   :  { %1809 = vmatpush.xpose.msk.msrb.mxu2 %vm221_vm11, %v1064_v24 }
 0xb13   :  { %1810 = vmatpush.xpose.msk.msrb.mxu2 %vm221_vm11, %v1062_v46 }
 0xb16   :  { %1811 = vmatmul.msk.f32.vlgmr.msrb.gmra.mxu2 %vm221_vm11, %v2596_v41 }
 0xb1d   :  { %v1027_v18 = vpop.permute.xlu2 %1026 }
 0xb1e   :  { %1812 = vmatmul.msk.f32.gmra.mxu2 %vm221_vm11, %v2592_v40 }
 0xb25   :  { %v1099_v48 = vpop.permute.xlu1 %1098 }
 0xb26   :  { %1813 = vmatpush.xpose.msk.msra.mxu3 %vm221_vm11, %v1099_v48 }
 0xb2d   :  { %v1097_v33 = vpop.permute.xlu0 %1096  ;;  %v1029_v42 = vpop.permute.xlu1 %1028 }
 0xb2e   :  { %1805 = vmatpush.xpose.msk.msra.mxu0 %vm221_vm11, %v1029_v42  ;;  %1814 = vmatpush.xpose.msk.msra.mxu3 %vm221_vm11, %v1097_v33 }
 0xb31   :  { %1815 = vmatmul.msk.f32.vlgmr.msra.gmra.mxu3 %vm221_vm11, %v2608_v43 }
 0xb32   :  { %1806 = vmatpush.xpose.msk.msra.mxu0 %vm221_vm11, %v1027_v18 }
 0xb35   :  { %1807 = vmatmul.msk.f32.vlgmr.msra.gmra.mxu0 %vm221_vm11, %v2616_v44 }
 0xb39   :  { %1816 = vmatmul.msk.f32.gmra.mxu3 %vm221_vm11, %v2602_v20 }
 0xb3d   :  { %1808 = vmatmul.msk.f32.gmra.mxu0 %vm221_vm11, %v2600_v8  ;;  %v1020_v21 = vpop.f32.mrf.mxu3 }
 0xb3e   :  { %v1021_v3 = vadd.f32 %v1020_v21, %v2226_v37  ;;  %v1889_v21 = vpack.i.bf16 %v2602_v20, %v2592_v40 }
 0xb40   :  { %v1131_v0 = vsel %vm358_vm15, %v1021_v3, -inf }
 0xb45   :  { %v1023_v49 = vpop.f32.mrf.mxu3 }
 0xb46   :  { %v1024_v53 = vadd.f32 %v1023_v49, %v2233_v45  ;;  %v1894_v49 = vpack.i.bf16 %v2608_v43, %v2596_v41 }
 0xb48   :  { %v1134_v1 = vsel %vm358_vm15, %v1024_v53, -inf }
 0xb99   :  { %v1090_v17 = vpop.f32.mrf.mxu2 }
 0xb9a   :  { %v1091_v58 = vadd.f32 %v1090_v17, %v2226_v37 }
 0xb9c   :  { %v1143_v39 = vsel %vm358_vm15, %v1091_v58, -inf }
 0xb9d   :  { %1144 = vmax.xlane.f32.xlu0 %v1143_v39  ;;  %v1899_v39 = vpack.i.bf16 %v2616_v44, %v2600_v8 }
 0xba1   :  { %v1093_v54 = vpop.f32.mrf.mxu2 }
 0xba2   :  { %v1094_v56 = vadd.f32 %v1093_v54, %v2233_v45 }
 0xba4   :  { %v1146_v61 = vsel %vm358_vm15, %v1094_v56, -inf }
 0xbb2   :  { %v1055_v14 = vpop.f32.mrf.mxu0 }
 0xbb3   :  { %v1056_v19 = vadd.f32 %v1055_v14, %v2226_v37  ;;  %v1904_v14 = vpack.i.bf16 %v2572_v5, %v2576_v31 }
 0xbb4   :  { %v1125_v38 = vpop.f32.mrf.mxu3 }
 0xbb5   :  { %v1126_v22 = vadd.f32 %v1125_v38, %v2226_v37  ;;  %v1137_v12 = vsel %vm358_vm15, %v1056_v19, -inf }
 0xbb6   :  { %1138 = vmax.xlane.f32.xlu2 %v1137_v12 }
 0xbb7   :  { %v1149_v51 = vsel %vm358_vm15, %v1126_v22, -inf }
 0xbb8   :  { %1150 = vmax.xlane.f32.xlu1 %v1149_v51 }
 0xbba   :  { %v1058_v59 = vpop.f32.mrf.mxu0 }
 0xbbb   :  { %v1059_v60 = vadd.f32 %v1058_v59, %v2233_v45 }
 0xbbc   :  { %v1128_v50 = vpop.f32.mrf.mxu3 }
 0xbbd   :  { %v1129_v55 = vadd.f32 %v1128_v50, %v2233_v45  ;;  %v1140_v15 = vsel %vm358_vm15, %v1059_v60, -inf }
 0xbbe   :  { %1147 = vmax.xlane.f32.xlu2 %v1146_v61 }
 0xbbf   :  { %v1152_v63 = vsel %vm358_vm15, %v1129_v55, -inf }
 0xbc0   :  { %1153 = vmax.xlane.f32.xlu0 %v1152_v63  ;;  %1141 = vmax.xlane.f32.xlu1 %v1140_v15 }
 0xbc6   :  { %1132 = vmax.xlane.f32.xlu2 %v1131_v0 }
 0xbc8   :  { %1135 = vmax.xlane.f32.xlu0 %v1134_v1 }
 0xc10   :  { %v1145_v2 = vpop.xlane.xlu0 %1144 }
 0xc11   :  { %v1159_v4 = vsub.f32 %v1091_v58, %v1145_v2 }
 0xc13   :  { %v1171_v6 = vmul.f32 1.442695, %v1159_v4 }
 0xc15   :  { %1958 = vpow2.f32 %v1171_v6 }
 0xc1b   :  { %v2656_v7 = vpop.eup %1958 }
 0xc1c   :  { %v1191_v9 = vsel %vm358_vm15, %v2656_v7, 0.0 }
 0xc1d   :  { %1192 = vadd.xlane.f32.xlu1 %v1191_v9 }
 0xc29   :  { %v1139_v10 = vpop.xlane.xlu2 %1138 }
 0xc2a   :  { %v1157_v37 = vsub.f32 %v1056_v19, %v1139_v10 }
 0xc2b   :  { %v1151_v62 = vpop.xlane.xlu1 %1150 }
 0xc2c   :  { %v1167_v45 = vmul.f32 1.442695, %v1157_v37  ;;  %v1161_v13 = vsub.f32 %v1126_v22, %v1151_v62 }
 0xc2e   :  { %1960 = vpow2.f32 %v1167_v45  ;;  %v1175_v25 = vmul.f32 1.442695, %v1161_v13 }
 0xc30   :  { %1962 = vpow2.f32 %v1175_v25 }
 0xc31   :  { %v1148_v26 = vpop.xlane.xlu2 %1147 }
 0xc32   :  { %v1160_v27 = vsub.f32 %v1094_v56, %v1148_v26 }
 0xc33   :  { %v1154_v28 = vpop.xlane.xlu0 %1153  ;;  %v1142_v29 = vpop.xlane.xlu1 %1141 }
 0xc34   :  { %v2660_v30 = vpop.eup %1960  ;;  %v1173_v34 = vmul.f32 1.442695, %v1160_v27  ;;  %v1162_v23 = vsub.f32 %v1129_v55, %v1154_v28  ;;  %v1158_v52 = vsub.f32 %v1059_v60, %v1142_v29 }
 0xc35   :  { %v1185_v36 = vsel %vm358_vm15, %v2660_v30, 0.0 }
 0xc36   :  { %v2664_v35 = vpop.eup %1962  ;;  %1964 = vpow2.f32 %v1173_v34  ;;  %v1177_v11 = vmul.f32 1.442695, %v1162_v23  ;;  %v1169_v24 = vmul.f32 1.442695, %v1158_v52  ;;  %1186 = vadd.xlane.f32.xlu0 %v1185_v36 }
 0xc37   :  { %v1197_v46 = vsel %vm358_vm15, %v2664_v35, 0.0 }
 0xc38   :  { %1966 = vpow2.f32 %v1177_v11  ;;  %1198 = vadd.xlane.f32.xlu2 %v1197_v46 }
 0xc39   :  { %1968 = vpow2.f32 %v1169_v24  ;;  %v1133_v38 = vpop.xlane.xlu2 %1132 }
 0xc3a   :  { %v1155_v44 = vsub.f32 %v1021_v3, %v1133_v38 }
 0xc3b   :  { %v1136_v19 = vpop.xlane.xlu0 %1135 }
 0xc3c   :  { %v2668_v48 = vpop.eup %1964  ;;  %v1156_v8 = vsub.f32 %v1024_v53, %v1136_v19  ;;  %v1163_v40 = vmul.f32 1.442695, %v1155_v44 }
 0xc3d   :  { %v1194_v33 = vsel %vm358_vm15, %v2668_v48, 0.0 }
 0xc3e   :  { %v2672_v42 = vpop.eup %1966  ;;  %1195 = vadd.xlane.f32.xlu1 %v1194_v33  ;;  %v1165_v22 = vmul.f32 1.442695, %v1156_v8 }
 0xc3f   :  { %v2674_v18 = vpop.eup %1968  ;;  %v1200_v17 = vsel %vm358_vm15, %v2672_v42, 0.0 }
 0xc40   :  { %1201 = vadd.xlane.f32.xlu2 %v1200_v17  ;;  %v1188_v58 = vsel %vm358_vm15, %v2674_v18, 0.0  ;;  %1970 = vpow2.f32 %v1165_v22 }
 0xc41   :  { %1189 = vadd.xlane.f32.xlu0 %v1188_v58  ;;  %1972 = vpow2.f32 %v1163_v40 }
 0xc46   :  { %v2692_v20 = vpop.eup %1970 }
 0xc47   :  { %v2694_v41 = vpop.eup %1972  ;;  %v1182_v43 = vsel %vm358_vm15, %v2692_v20, 0.0 }
 0xc48   :  { %v1179_v5 = vsel %vm358_vm15, %v2694_v41, 0.0 }
 0xc55   :  { %1900 = vrot.lane.b32.xlu0 %v1899_v39, %s2006_s20 }
 0xc57   :  { %1890 = vrot.lane.b32.xlu1 %v1889_v21, %s2006_s20 }
 0xc58   :  { %1895 = vrot.lane.b32.xlu2 %v1894_v49, %s2006_s20 }
 0xc60   :  { %1905 = vrot.lane.b32.xlu2 %v1904_v14, %s2006_s20 }
 0xc7f   :  { %1183 = vadd.xlane.f32.xlu0 %v1182_v43 }
 0xc81   :  { %1180 = vadd.xlane.f32.xlu1 %v1179_v5 }
 0xc90   :  { %v1193_v31 = vpop.xlane.xlu1 %1192 }
 0xc91   :  { %1974 = vrcp.f32 %v1193_v31  ;;  %v1274_v9 = vand.u32 2147483648, %v1193_v31  ;;  %vm1268_vm13 = vweird.f32 %v1193_v31  ;;  %v1272_v62 = vand.u32 2147483647, %v1193_v31 }
 0xc93   :  { %v1275_v27 = vor.u32 1.1754944e-38, %v1274_v9  ;;  %vm1273_vm0 = vcmp.eq.f32.partialorder %v1272_v62, 8.507059e+37 }
 0xc97   :  { %v1975_v51 = vpop.eup %1974 }
 0xc98   :  { %v1264_v56 = vmul.f32 %v1975_v51, %v1193_v31  ;;  %vm1269_vm12 = vweird.f32 %v1975_v51 }
 0xc99   :  { %vm1270_vm14 = vmor %vm1268_vm13, %vm1269_vm12 }
 0xc9a   :  { %v1265_v60 = vsub.f32 1.0, %v1264_v56 }
 0xc9c   :  { %v1266_v3 = vmul.f32 %v1975_v51, %v1265_v60 }
 0xc9e   :  { %v1267_v2 = vadd.f32 %v1975_v51, %v1266_v3 }
 0xca0   :  { %v1271_v25 = vsel %vm1270_vm14, %v1975_v51, %v1267_v2 }
 0xca1   :  { %v1276_v52 = vsel %vm1273_vm0, %v1275_v27, %v1271_v25 }
 0xca2   :  { %v1277_v38 = vmul.f32 %v2656_v7, %v1276_v52 }
 0xca9   :  { %v1187_v12 = vpop.xlane.xlu0 %1186 }
 0xcaa   :  { %1976 = vrcp.f32 %v1187_v12  ;;  %v1242_v36 = vand.u32 2147483647, %v1187_v12  ;;  %v1244_v11 = vand.u32 2147483648, %v1187_v12  ;;  %vm1238_vm2 = vweird.f32 %v1187_v12 }
 0xcab   :  { %v2700_v54 = vpop.xlane.xlu2 %1198 }
 0xcac   :  { %1978 = vrcp.f32 %v2700_v54  ;;  %v1302_v24 = vand.u32 2147483647, %v2700_v54  ;;  %v1304_v46 = vand.u32 2147483648, %v2700_v54  ;;  %vm1243_vm6 = vcmp.eq.f32.partialorder %v1242_v36, 8.507059e+37 }
 0xcad   :  { %v1245_v8 = vor.u32 1.1754944e-38, %v1244_v11  ;;  %vm1298_vm7 = vweird.f32 %v2700_v54 }
 0xcae   :  { %vm2755_vm9 = vcmp.eq.f32.partialorder %v1302_v24, 8.507059e+37  ;;  %v1305_v43 = vor.u32 1.1754944e-38, %v1304_v46 }
 0xcb0   :  { %v2703_v59 = vpop.eup %1976 }
 0xcb1   :  { %v2705_v50 = vpop.xlane.xlu1 %1195  ;;  %v1234_v15 = vmul.f32 %v2703_v59, %v1187_v12  ;;  %vm1239_vm1 = vweird.f32 %v2703_v59 }
 0xcb2   :  { %v2711_v63 = vpop.eup %1978  ;;  %vm2739_vm4 = vmor %vm1238_vm2, %vm1239_vm1  ;;  %vm1283_vm12 = vweird.f32 %v2705_v50 }
 0xcb3   :  { %v2707_v55 = vpop.xlane.xlu2 %1201  ;;  %v1294_v53 = vmul.f32 %v2711_v63, %v2700_v54  ;;  %v1235_v0 = vsub.f32 1.0, %v1234_v15  ;;  %vm1299_vm5 = vweird.f32 %v2711_v63 }
 0xcb4   :  { %v2709_v61 = vpop.xlane.xlu0 %1189  ;;  %vm2751_vm8 = vmor %vm1298_vm7, %vm1299_vm5 }
 0xcb5   :  { %1980 = vrcp.f32 %v2709_v61  ;;  %v1295_v10 = vsub.f32 1.0, %v1294_v53  ;;  %v1236_v45 = vmul.f32 %v2703_v59, %v1235_v0  ;;  %vm1253_vm13 = vweird.f32 %v2709_v61 }
 0xcb6   :  { %1982 = vrcp.f32 %v2705_v50  ;;  %v1259_v56 = vand.u32 2147483648, %v2709_v61  ;;  %v1257_v0 = vand.u32 2147483647, %v2709_v61 }
 0xcb7   :  { %1984 = vrcp.f32 %v2707_v55  ;;  %v1296_v28 = vmul.f32 %v2711_v63, %v1295_v10  ;;  %v1237_v34 = vadd.f32 %v2703_v59, %v1236_v45  ;;  %v1289_v10 = vand.u32 2147483648, %v2705_v50 }
 0xcb8   :  { %v1260_v27 = vor.u32 1.1754944e-38, %v1259_v56 }
 0xcb9   :  { %v1297_v39 = vadd.f32 %v2711_v63, %v1296_v28  ;;  %v1241_v14 = vsel %vm2739_vm4, %v2703_v59, %v1237_v34  ;;  %vm1313_vm4 = vweird.f32 %v2707_v55 }
 0xcba   :  { %v1246_v31 = vsel %vm1243_vm6, %v1245_v8, %v1241_v14  ;;  %vm1258_vm6 = vcmp.eq.f32.partialorder %v1257_v0, 8.507059e+37 }
 0xcbb   :  { %v2719_v1 = vpop.eup %1980  ;;  %v2721_v4 = vpop.permute.xlu2 %1895  ;;  %v1301_v12 = vsel %vm2751_vm8, %v2711_v63, %v1297_v39  ;;  %v1247_v2 = vmul.f32 %v2660_v30, %v1246_v31  ;;  %v1319_v30 = vand.u32 2147483648, %v2707_v55 }
 0xcbc   :  { %v2723_v6 = vpop.eup %1982  ;;  %v1249_v13 = vmul.f32 %v2719_v1, %v2709_v61  ;;  %vm1254_vm14 = vweird.f32 %v2719_v1  ;;  %v1306_v63 = vsel %vm2755_vm9, %v1305_v43, %v1301_v12  ;;  %v1897_v62 = vunpack.i.l.bf16 %v2721_v4 }
 0xcbd   :  { %v2725_v37 = vpop.eup %1984  ;;  %v1279_v26 = vmul.f32 %v2723_v6, %v2705_v50  ;;  %vm1284_vm0 = vweird.f32 %v2723_v6  ;;  %vm2779_vm1 = vmor %vm1253_vm13, %vm1254_vm14  ;;  %v1898_v25 = vunpack.i.h.bf16 %v2721_v4  ;;  %v1287_v61 = vand.u32 2147483647, %v2705_v50 }
 0xcbe   :  { %v1309_v29 = vmul.f32 %v2725_v37, %v2707_v55  ;;  %v1250_v23 = vsub.f32 1.0, %v1249_v13  ;;  %vm1314_vm2 = vweird.f32 %v2725_v37  ;;  %v1307_v28 = vmul.f32 %v2664_v35, %v1306_v63  ;;  %vm1285_vm5 = vmor %vm1283_vm12, %vm1284_vm0 }
 0xcbf   :  { %v1280_v33 = vsub.f32 1.0, %v1279_v26  ;;  %v1317_v4 = vand.u32 2147483647, %v2707_v55  ;;  %vm1315_vm7 = vmor %vm1313_vm4, %vm1314_vm2  ;;  %vm1288_vm8 = vcmp.eq.f32.partialorder %v1287_v61, 8.507059e+37 }
 0xcc0   :  { %v1310_v21 = vsub.f32 1.0, %v1309_v29  ;;  %v1251_v19 = vmul.f32 %v2719_v1, %v1250_v23  ;;  %v1290_v29 = vor.u32 1.1754944e-38, %v1289_v10  ;;  %v1320_v23 = vor.u32 1.1754944e-38, %v1319_v30 }
 0xcc1   :  { %v1281_v5 = vmul.f32 %v2723_v6, %v1280_v33  ;;  %vm1318_vm9 = vcmp.eq.f32.partialorder %v1317_v4, 8.507059e+37 }
 0xcc2   :  { %v1311_v54 = vmul.f32 %v2725_v37, %v1310_v21  ;;  %v1252_v60 = vadd.f32 %v2719_v1, %v1251_v19 }
 0xcc3   :  { %v1906_v17 = vpop.permute.xlu2 %1905  ;;  %v1282_v9 = vadd.f32 %v2723_v6, %v1281_v5 }
 0xcc4   :  { %v1907_v49 = vunpack.i.l.bf16 %v1906_v17  ;;  %v1908_v44 = vunpack.i.h.bf16 %v1906_v17  ;;  %v1312_v13 = vadd.f32 %v2725_v37, %v1311_v54  ;;  %v1256_v26 = vsel %vm2779_vm1, %v2719_v1, %v1252_v60  ;;  %v1827_v60 = vld [vmem:[%s2974_s4 + $0x30] sm:$0xff] }
 0xcc5   :  { %v1286_v1 = vsel %vm1285_vm5, %v2723_v6, %v1282_v9  ;;  %v1261_v35 = vsel %vm1258_vm6, %v1260_v27, %v1256_v26 }
 0xcc6   :  { %1349 = vmatpush.msrb.mxu0 %v1907_v49  ;;  %v1316_v34 = vsel %vm1315_vm7, %v2725_v37, %v1312_v13  ;;  %v1291_v50 = vsel %vm1288_vm8, %v1290_v29, %v1286_v1  ;;  %v1262_v55 = vmul.f32 %v2674_v18, %v1261_v35 }
 0xcc7   :  { %v1901_v7 = vpop.permute.xlu0 %1900  ;;  %v1321_v52 = vsel %vm1318_vm9, %v1320_v23, %v1316_v34  ;;  %v1292_v6 = vmul.f32 %v2668_v48, %v1291_v50 }
 0xcc8   :  { %v1902_v51 = vunpack.i.l.bf16 %v1901_v7  ;;  %1350 = vmatpush.msrb.mxu0 %v1908_v44  ;;  %v1903_v15 = vunpack.i.h.bf16 %v1901_v7  ;;  %v1322_v36 = vmul.f32 %v2672_v42, %v1321_v52 }
 0xcc9   :  { %v1891_v59 = vpop.permute.xlu1 %1890 }
 0xcca   :  { %1384 = vmatpush.msra.mxu1 %v1902_v51  ;;  %v1893_v3 = vunpack.i.h.bf16 %v1891_v59  ;;  %v1892_v53 = vunpack.i.l.bf16 %v1891_v59 }
 0xccc   :  { %1385 = vmatpush.msra.mxu1 %v1903_v15  ;;  %1419 = vmatpush.msra.mxu2 %v1892_v53  ;;  %v1826_v15 = vld [vmem:[%s2974_s4 + $0x28] sm:$0xff] }
 0xccd   :  { %1819 = vmatmul.msk.f32.vlgmr.msra.gmra.mxu1 %vm358_vm15, %v1247_v2  ;;  %1454 = vmatpush.msrb.mxu3 %v1893_v3  ;;  %v1825_v3 = vld [vmem:[%s2974_s4 + $0x20] sm:$0xff] }
 0xcce   :  { %1420 = vmatpush.msra.mxu2 %v1897_v62 }
 0xccf   :  { %1455 = vmatpush.msrb.mxu3 %v1898_v25  ;;  %1821 = vmatmul.msk.f32.vlgmr.msra.gmra.mxu2 %vm358_vm15, %v1277_v38 }
 0xcd0   :  { %1823 = vmatmul.msk.f32.vlgmr.msrb.gmra.mxu3 %vm358_vm15, %v1307_v28  ;;  %v1498_v28 = vperm.slane %v2565_v57, 4 }
 0xcd5   :  { %1820 = vmatmul.msk.f32.gmra.mxu1 %vm358_vm15, %v1262_v55 }
 0xcd7   :  { %1822 = vmatmul.msk.f32.gmra.mxu2 %vm358_vm15, %v1292_v6 }
 0xcd8   :  { %1824 = vmatmul.msk.f32.gmra.mxu3 %vm358_vm15, %v1322_v36 }
 0xcf2   :  { %v1184_v11 = vpop.xlane.xlu0 %1183 }
 0xcf3   :  { %1986 = vrcp.f32 %v1184_v11  ;;  %v1229_v8 = vand.u32 2147483648, %v1184_v11  ;;  %vm1223_vm2 = vweird.f32 %v1184_v11  ;;  %v1227_v40 = vand.u32 2147483647, %v1184_v11 }
 0xcf4   :  { %v1181_v37 = vpop.xlane.xlu1 %1180 }
 0xcf5   :  { %1988 = vrcp.f32 %v1181_v37  ;;  %v1214_v39 = vand.u32 2147483648, %v1181_v37  ;;  %v1212_v48 = vand.u32 2147483647, %v1181_v37  ;;  %vm1208_vm13 = vweird.f32 %v1181_v37 }
 0xcf6   :  { %v1230_v5 = vor.u32 1.1754944e-38, %v1229_v8  ;;  %vm1228_vm5 = vcmp.eq.f32.partialorder %v1227_v40, 8.507059e+37 }
 0xcf7   :  { %v1215_v14 = vor.u32 1.1754944e-38, %v1214_v39  ;;  %vm1213_vm0 = vcmp.eq.f32.partialorder %v1212_v48, 8.507059e+37  ;;  %v1831_v39 = vld [vmem:[%s2976_s5 + $0x20] sm:$0xff] }
 0xcf9   :  { %v1987_v24 = vpop.eup %1986 }
 0xcfa   :  { %v1219_v46 = vmul.f32 %v1987_v24, %v1184_v11  ;;  %vm1224_vm1 = vweird.f32 %v1987_v24 }
 0xcfb   :  { %v1989_v33 = vpop.eup %1988  ;;  %vm1225_vm4 = vmor %vm1223_vm2, %vm1224_vm1 }
 0xcfc   :  { %v1220_v17 = vsub.f32 1.0, %v1219_v46  ;;  %v1204_v18 = vmul.f32 %v1989_v33, %v1181_v37  ;;  %vm1209_vm12 = vweird.f32 %v1989_v33 }
 0xcfd   :  { %vm1210_vm14 = vmor %vm1208_vm13, %vm1209_vm12 }
 0xcfe   :  { %v1205_v58 = vsub.f32 1.0, %v1204_v18  ;;  %v1221_v21 = vmul.f32 %v1987_v24, %v1220_v17  ;;  %v1834_v17 = vld [vmem:[%s2976_s5 + $0x38] sm:$0xff]  ;;  %v1833_v18 = vld [vmem:[%s2976_s5 + $0x30] sm:$0xff] }
 0xcff   :  { %1608 = vmatpush.msrb.mxu1 %v1834_v17 }
 0xd00   :  { %v1206_v49 = vmul.f32 %v1989_v33, %v1205_v58  ;;  %v1222_v38 = vadd.f32 %v1987_v24, %v1221_v21  ;;  %v1832_v58 = vld [vmem:[%s2976_s5 + $0x28] sm:$0xff] }
 0xd01   :  { %1609 = vmatpush.msrb.mxu1 %v1833_v18 }
 0xd02   :  { %v1207_v42 = vadd.f32 %v1989_v33, %v1206_v49  ;;  %v1226_v43 = vsel %vm1225_vm4, %v1987_v24, %v1222_v38 }
 0xd03   :  { %v1231_v7 = vsel %vm1228_vm5, %v1230_v5, %v1226_v43  ;;  %1610 = vmatpush.msrb.mxu1 %v1832_v58  ;;  %v1853_v43 = vld [vmem:[%s2977_s6 + $0xf8] sm:$0xff]  ;;  %v1852_v5 = vld [vmem:[%s2977_s6 + $0xf0] sm:$0xff] }
 0xd04   :  { %v1211_v19 = vsel %vm1210_vm14, %v1989_v33, %v1207_v42  ;;  %v1232_v31 = vmul.f32 %v2692_v20, %v1231_v7  ;;  %v1828_v20 = vld [vmem:[%s2974_s4 + $0x38] sm:$0xff]  ;;  %1638 = vmatpush.msrb.mxu2 %v1853_v43 }
 0xd05   :  { %v1216_v44 = vsel %vm1213_vm0, %v1215_v14, %v1211_v19  ;;  %1517 = vmatpush.msra.mxu0 %v1828_v20  ;;  %1611 = vmatpush.msrb.mxu1 %v1831_v39 }
 0xd06   :  { %v1217_v22 = vmul.f32 %v2694_v41, %v1216_v44  ;;  %1639 = vmatpush.msrb.mxu2 %v1852_v5 }
 0xd07   :  { %1518 = vmatpush.msra.mxu0 %v1827_v60  ;;  %v1849_v60 = vld [vmem:[%s2977_s6 + $0xd8] sm:$0xff] }
 0xd08   :  { %1817 = vmatmul.msk.f32.vlgmr.msrb.gmra.mxu0 %vm358_vm15, %v1217_v22  ;;  %v1574_v22 = vperm.slane %v2565_v57, 2 }
 0xd09   :  { %1519 = vmatpush.msra.mxu0 %v1826_v15  ;;  %v1848_v15 = vld [vmem:[%s2977_s6 + $0xd0] sm:$0xff] }
 0xd0b   :  { %1520 = vmatpush.msra.mxu0 %v1825_v3  ;;  %v1847_v3 = vld [vmem:[%s2977_s6 + $0xc8] sm:$0xff] }
 0xd10   :  { %1818 = vmatmul.msk.f32.gmra.mxu0 %vm358_vm15, %v1232_v31  ;;  %v1577_v31 = vperm.slane %v2565_v57, 3 }
 0xd4a   :  { %v1387_v12 = vpop.f32.mrf.mxu1 }
 0xd4b   :  { %1465 = vrot.lane.b32.xlu2 %v1387_v12, %s2009_s0  ;;  %v1851_v12 = vld [vmem:[%s2977_s6 + $0xe8] sm:$0xff] }
 0xd4c   :  { %1640 = vmatpush.msrb.mxu2 %v1851_v12 }
 0xd52   :  { %v1422_v54 = vpop.f32.mrf.mxu2  ;;  %v1390_v59 = vpop.f32.mrf.mxu1 }
 0xd53   :  { %v1457_v51 = vpop.f32.mrf.mxu3  ;;  %1473 = vrot.lane.b32.xlu2 %v1422_v54, %s2007_s21 }
 0xd5a   :  { %v1425_v41 = vpop.f32.mrf.mxu2 }
 0xd5b   :  { %v1460_v56 = vpop.f32.mrf.mxu3  ;;  %1481 = vrot.lane.b32.xlu2 %v1457_v51, %s2008_s22  ;;  %1475 = vrot.lane.b32.xlu1 %v1425_v41, %s2007_s21 }
 0xd5c   :  { %1483 = vrot.lane.b32.xlu0 %v1460_v56, %s2008_s22  ;;  %v1850_v56 = vld [vmem:[%s2977_s6 + $0xe0] sm:$0xff] }
 0xd5d   :  { %1641 = vmatpush.msrb.mxu2 %v1850_v56 }
 0xd5f   :  { %1642 = vmatpush.msrb.mxu2 %v1849_v60 }
 0xd61   :  { %1643 = vmatpush.msrb.mxu2 %v1848_v15 }
 0xd63   :  { %1467 = vrot.lane.b32.xlu2 %v1390_v59, %s2009_s0  ;;  %1644 = vmatpush.msrb.mxu2 %v1847_v3 }
 0xd85   :  { %v1352_v63 = vpop.f32.mrf.mxu0 }
 0xd8d   :  { %v1355_v13 = vpop.f32.mrf.mxu0 }
 0xda5   :  { %v1466_v53 = vpop.permute.xlu2 %1465 }
 0xda6   :  { %v1487_v2 = vsel %vm221_vm11, %v1352_v63, %v1466_v53  ;;  %v1846_v53 = vld [vmem:[%s2977_s6 + $0xc0] sm:$0xff]  ;;  %v1845_v63 = vld [vmem:[%s2977_s6 + $0xb8] sm:$0xff] }
 0xda7   :  { %1645 = vmatpush.msrb.mxu2 %v1846_v53 }
 0xda9   :  { %1646 = vmatpush.msrb.mxu2 %v1845_v63 }
 0xdad   :  { %v1474_v0 = vpop.permute.xlu2 %1473 }
 0xdae   :  { %v1489_v9 = vsel %vm358_vm15, %v1487_v2, %v1474_v0 }
 0xdb5   :  { %v1482_v10 = vpop.permute.xlu2 %1481 }
 0xdb6   :  { %v1491_v62 = vsel %vm719_vm10, %v1489_v9, %v1482_v10  ;;  %v1844_v9 = vld [vmem:[%s2977_s6 + $0xb0] sm:$0xff] }
 0xdb7   :  { %1829 = vmatmul.msk.f32.vlgmr.msra.gmra.mxu0 %vm112_vm3, %v1491_v62  ;;  %v1843_v62 = vld [vmem:[%s2977_s6 + $0xa8] sm:$0xff]  ;;  %1647 = vmatpush.msrb.mxu2 %v1844_v9 }
 0xdb9   :  { %1648 = vmatpush.msrb.mxu2 %v1843_v62 }
 0xdbd   :  { %v1468_v45 = vpop.permute.xlu2 %1467 }
 0xdbe   :  { %v1488_v30 = vsel %vm221_vm11, %v1355_v13, %v1468_v45  ;;  %v1842_v13 = vld [vmem:[%s2977_s6 + $0xa0] sm:$0xff] }
 0xdbf   :  { %1649 = vmatpush.msrb.mxu2 %v1842_v13 }
 0xdcd   :  { %v1476_v25 = vpop.permute.xlu1 %1475 }
 0xdce   :  { %v1484_v26 = vpop.permute.xlu0 %1483  ;;  %v1490_v61 = vsel %vm358_vm15, %v1488_v30, %v1476_v25  ;;  %v1841_v25 = vld [vmem:[%s2977_s6 + $0x98] sm:$0xff] }
 0xdcf   :  { %v1492_v27 = vsel %vm719_vm10, %v1490_v61, %v1484_v26  ;;  %1650 = vmatpush.msrb.mxu2 %v1841_v25 }
 0xdd0   :  { %1830 = vmatmul.msk.f32.gmra.mxu0 %vm112_vm3, %v1492_v27 }
 0xe34   :  { %v1522_v4 = vpop.f32.mrf.mxu0 }
 0xe35   :  { %v1523_v1 = vadd.f32 %v1522_v4, %v1498_v28 }
 0xe37   :  { %v2843_v29 = vadd.f32 %v1523_v1, %v2534_v47  ;;  %v1840_v1 = vld [vmem:[%s2977_s6 + $0x90] sm:$0xff] }
 0xe38   :  { %1651 = vmatpush.msrb.mxu2 %v1840_v1 }
 0xe39   :  { %v1530_v35 = vsel %vm112_vm3, %v2843_v29, 0.0 }
 0xe3a   :  { %1531 = vadd.xlane.f32.xlu2 %v1530_v35  ;;  %v1839_v35 = vld [vmem:[%s2977_s6 + $0x88] sm:$0xff] }
 0xe3b   :  { %1652 = vmatpush.msrb.mxu2 %v1839_v35 }
 0xe4d   :  { %v1525_v34 = vpop.f32.mrf.mxu0 }
 0xe4e   :  { %v1526_v23 = vadd.f32 %v1525_v34, %v1498_v28  ;;  %v1838_v34 = vld [vmem:[%s2977_s6 + $0x80] sm:$0xff] }
 0xe4f   :  { %1653 = vmatpush.msrb.mxu2 %v1838_v34 }
 0xe50   :  { %v2848_v50 = vadd.f32 %v1526_v23, %v2539_v16  ;;  %v1910_v23 = vld [vmem:[%s2975_s8 + $0x1] ss:$0 sm:$0xff] }
 0xe52   :  { %v1533_v55 = vsel %vm112_vm3, %v2848_v50, 0.0 }
 0xe53   :  { %1534 = vadd.xlane.f32.xlu0 %v1533_v55 }
 0xead   :  { %v1532_v52 = vpop.xlane.xlu2 %1531 }
 0xeae   :  { %v1536_v6 = vmul.f32 %v1532_v52, %v2124_v32 }
 0xeb0   :  { %v1538_v36 = vsub.f32 %v2843_v29, %v1536_v6 }
 0xeb2   :  { %v1540_v47 = vmul.f32 %v1538_v36, %v1538_v36 }
 0xeb4   :  { %v1542_v11 = vsel %vm112_vm3, %v1540_v47, 0.0 }
 0xeb5   :  { %1543 = vadd.xlane.f32.xlu1 %v1542_v11 }
 0xec6   :  { %v1535_v37 = vpop.xlane.xlu0 %1534 }
 0xec7   :  { %v1537_v24 = vmul.f32 %v1535_v37, %v2124_v32  ;;  %v1663_v37 = vperm.slane %v2565_v57, 5 }
 0xec9   :  { %v2857_v46 = vsub.f32 %v2848_v50, %v1537_v24 }
 0xecb   :  { %v1541_v16 = vmul.f32 %v2857_v46, %v2857_v46 }
 0xecd   :  { %v1545_v33 = vsel %vm112_vm3, %v1541_v16, 0.0 }
 0xece   :  { %1546 = vadd.xlane.f32.xlu2 %v1545_v33 }
 0xf28   :  { %v1544_v21 = vpop.xlane.xlu1 %1543 }
 0xf29   :  { %v1548_v49 = vmul.f32 %v1544_v21, %v2124_v32 }
 0xf2b   :  { %v1550_v48 = vadd.f32 1e-05, %v1548_v49 }
 0xf2d   :  { %1990 = vrsqrt.f32 %v1550_v48  ;;  %vm1558_vm15 = vweird.f32 %v1550_v48 }
 0xf33   :  { %v1991_v42 = vpop.eup %1990 }
 0xf34   :  { %v1553_v14 = vmul.f32 %v1991_v42, %v1550_v48  ;;  %vm1559_vm11 = vweird.f32 %v1991_v42 }
 0xf35   :  { %vm1560_vm10 = vmor %vm1558_vm15, %vm1559_vm11 }
 0xf36   :  { %v1554_v19 = vmul.f32 %v1991_v42, %v1553_v14 }
 0xf38   :  { %v1555_v38 = vmul.f32 0.5, %v1554_v19 }
 0xf3a   :  { %v1556_v8 = vsub.f32 1.5, %v1555_v38 }
 0xf3c   :  { %v1557_v44 = vmul.f32 %v1991_v42, %v1556_v8 }
 0xf3e   :  { %v1561_v40 = vsel %vm1560_vm10, %v1991_v42, %v1557_v44  ;;  %v1719_v44 = vld [vmem:[%s2979_s10 + $0x10] sm:$0xff] }
 0xf3f   :  { %v1572_v7 = vmul.f32 %v1561_v40, %v1538_v36  ;;  %v1717_v40 = vld [vmem:[%s2979_s10] sm:$0xff] }
 0xf41   :  { %v1575_v54 = vmul.f32 %v1574_v22, %v1572_v7  ;;  %v1547_v51 = vpop.xlane.xlu2 %1546 }
 0xf42   :  { %v1549_v41 = vmul.f32 %v1547_v51, %v2124_v32 }
 0xf43   :  { %v1578_v59 = vadd.f32 %v1577_v31, %v1575_v54 }
 0xf44   :  { %v1551_v20 = vadd.f32 1e-05, %v1549_v41  ;;  %v1666_v41 = vld [vmem:[%s2980_s9] sm:$0x3] }
 0xf45   :  { %1836 = vmatmul.msk.f32.vlgmr.msrb.gmra.mxu1 %vm112_vm3, %v1578_v59  ;;  %v1714_v3 = vperm.slane %v1666_v41, 1 }
 0xf46   :  { %1992 = vrsqrt.f32 %v1551_v20  ;;  %vm1568_vm7 = vweird.f32 %v1551_v20 }
 0xf4c   :  { %v1993_v0 = vpop.eup %1992 }
 0xf4d   :  { %v1563_v2 = vmul.f32 %v1993_v0, %v1551_v20  ;;  %vm1569_vm6 = vweird.f32 %v1993_v0  ;;  %v1711_v20 = vperm.slane %v1666_v41, 0 }
 0xf4e   :  { %vm1570_vm8 = vmor %vm1568_vm7, %vm1569_vm6 }
 0xf4f   :  { %v1564_v10 = vmul.f32 %v1993_v0, %v1563_v2 }
 0xf51   :  { %v1565_v45 = vmul.f32 0.5, %v1564_v10 }
 0xf53   :  { %v1566_v30 = vsub.f32 1.5, %v1565_v45 }
 0xf55   :  { %v1567_v26 = vmul.f32 %v1993_v0, %v1566_v30 }
 0xf57   :  { %v1571_v61 = vsel %vm1570_vm8, %v1993_v0, %v1567_v26 }
 0xf58   :  { %v1573_v27 = vmul.f32 %v1571_v61, %v2857_v46 }
 0xf5a   :  { %v1576_v28 = vmul.f32 %v1574_v22, %v1573_v27  ;;  %v1718_v22 = vld [vmem:[%s2979_s10 + $0x8] sm:$0xff] }
 0xf5c   :  { %v1579_v4 = vadd.f32 %v1577_v31, %v1576_v28 }
 0xf5e   :  { %1837 = vmatmul.msk.f32.gmra.mxu1 %vm112_vm3, %v1579_v4 }
 0xfc2   :  { %v1613_v55 = vpop.f32.mrf.mxu1 }
 0xfc3   :  { %v1614_v52 = vadd.f32 %v1910_v23, %v1613_v55 }
 0xfc5   :  { %v1619_v6 = vmax.f32 %v1614_v52, 0.0 }
 0xfc7   :  { %1654 = vmatmul.f32.vlgmr.msrb.gmra.mxu2 %v1619_v6 }
 0xfdb   :  { %v1616_v36 = vpop.f32.mrf.mxu1 }
 0xfdc   :  { %v1617_v47 = vadd.f32 %v1910_v23, %v1616_v36 }
 0xfde   :  { %v1620_v11 = vmax.f32 %v1617_v47, 0.0 }
 0xfe0   :  { %1657 = vmatmul.f32.gmra.mxu2 %v1620_v11 }
0x104a   :  { %v1655_v24 = vpop.f32.mrf.mxu2 }
0x104b   :  { %v1661_v46 = vadd.f32 %v1655_v24, %v2843_v29 }
0x104d   :  { %v1664_v16 = vadd.f32 %v1663_v37, %v1661_v46 }
0x104f   :  { %v1667_v33 = vsel %vm112_vm3, %v1664_v16, 0.0 }
0x1050   :  { %1668 = vadd.xlane.f32.xlu2 %v1667_v33 }
0x1063   :  { %v1658_v17 = vpop.f32.mrf.mxu2 }
0x1064   :  { %v1662_v18 = vadd.f32 %v1658_v17, %v2848_v50  ;;  %v1720_v50 = vld [vmem:[%s2979_s10 + $0x18] sm:$0xff] }
0x1065   :  { %1743 = vmatpush.msra.mxu3 %v1720_v50 }
0x1066   :  { %v1665_v58 = vadd.f32 %v1663_v37, %v1662_v18 }
0x1067   :  { %1744 = vmatpush.msra.mxu3 %v1719_v44 }
0x1068   :  { %v1670_v39 = vsel %vm112_vm3, %v1665_v58, 0.0 }
0x1069   :  { %1671 = vadd.xlane.f32.xlu2 %v1670_v39  ;;  %1745 = vmatpush.msra.mxu3 %v1718_v22 }
0x106b   :  { %1746 = vmatpush.msra.mxu3 %v1717_v40 }
0x10c3   :  { %v1669_v21 = vpop.xlane.xlu2 %1668 }
0x10c4   :  { %v1673_v49 = vmul.f32 %v1669_v21, %v2124_v32 }
0x10c6   :  { %v1675_v48 = vsub.f32 %v1664_v16, %v1673_v49 }
0x10c8   :  { %v1677_v42 = vmul.f32 %v1675_v48, %v1675_v48 }
0x10ca   :  { %v1679_v57 = vsel %vm112_vm3, %v1677_v42, 0.0 }
0x10cb   :  { %1680 = vadd.xlane.f32.xlu0 %v1679_v57 }
0x10dc   :  { %v1672_v29 = vpop.xlane.xlu2 %1671 }
0x10dd   :  { %v1674_v14 = vmul.f32 %v1672_v29, %v2124_v32 }
0x10df   :  { %v1676_v19 = vsub.f32 %v1665_v58, %v1674_v14 }
0x10e1   :  { %v1678_v38 = vmul.f32 %v1676_v19, %v1676_v19 }
0x10e3   :  { %v1682_v8 = vsel %vm112_vm3, %v1678_v38, 0.0 }
0x10e4   :  { %1683 = vadd.xlane.f32.xlu1 %v1682_v8 }
0x113e   :  { %v1681_v43 = vpop.xlane.xlu0 %1680 }
0x113f   :  { %v1685_v5 = vmul.f32 %v1681_v43, %v2124_v32 }
0x1141   :  { %v1687_v7 = vadd.f32 1e-05, %v1685_v5 }
0x1143   :  { %1994 = vrsqrt.f32 %v1687_v7  ;;  %vm1695_vm12 = vweird.f32 %v1687_v7 }
0x1149   :  { %v1995_v31 = vpop.eup %1994 }
0x114a   :  { %v1690_v12 = vmul.f32 %v1995_v31, %v1687_v7  ;;  %vm1696_vm9 = vweird.f32 %v1995_v31 }
0x114b   :  { %vm1697_vm13 = vmor %vm1695_vm12, %vm1696_vm9 }
0x114c   :  { %v1691_v54 = vmul.f32 %v1995_v31, %v1690_v12 }
0x114e   :  { %v1692_v51 = vmul.f32 0.5, %v1691_v54 }
0x1150   :  { %v1693_v56 = vsub.f32 1.5, %v1692_v51 }
0x1152   :  { %v1694_v59 = vmul.f32 %v1995_v31, %v1693_v56 }
0x1154   :  { %v1698_v60 = vsel %vm1697_vm13, %v1995_v31, %v1694_v59 }
0x1155   :  { %v1709_v15 = vmul.f32 %v1698_v60, %v1675_v48 }
0x1157   :  { %v1712_v53 = vmul.f32 %v1711_v20, %v1709_v15  ;;  %v1684_v0 = vpop.xlane.xlu1 %1683 }
0x1158   :  { %v1686_v63 = vmul.f32 %v1684_v0, %v2124_v32  ;;  %v1911_v32 = vld [vmem:[%s2978_s11] ss:$0 sm:$0xff] }
0x1159   :  { %v1715_v2 = vadd.f32 %v1714_v3, %v1712_v53 }
0x115a   :  { %v1688_v9 = vadd.f32 1e-05, %v1686_v63 }
0x115b   :  { %1854 = vmatmul.msk.f32.vlgmr.msra.gmra.mxu3 %vm112_vm3, %v1715_v2 }
0x115c   :  { %1996 = vrsqrt.f32 %v1688_v9  ;;  %vm1705_vm0 = vweird.f32 %v1688_v9 }
0x1162   :  { %v1997_v10 = vpop.eup %1996 }
0x1163   :  { %v1700_v62 = vmul.f32 %v1997_v10, %v1688_v9  ;;  %vm1706_vm14 = vweird.f32 %v1997_v10 }
0x1164   :  { %vm1707_vm1 = vmor %vm1705_vm0, %vm1706_vm14 }
0x1165   :  { %v1701_v45 = vmul.f32 %v1997_v10, %v1700_v62 }
0x1167   :  { %v1702_v13 = vmul.f32 0.5, %v1701_v45 }
0x1169   :  { %v1703_v30 = vsub.f32 1.5, %v1702_v13 }
0x116b   :  { %v1704_v25 = vmul.f32 %v1997_v10, %v1703_v30 }
0x116d   :  { %v1708_v26 = vsel %vm1707_vm1, %v1997_v10, %v1704_v25 }
0x116e   :  { %v1710_v61 = vmul.f32 %v1708_v26, %v1676_v19 }
0x1170   :  { %v1713_v27 = vmul.f32 %v1711_v20, %v1710_v61 }
0x1172   :  { %v1716_v28 = vadd.f32 %v1714_v3, %v1713_v27 }
0x1174   :  { %1855 = vmatmul.msk.f32.gmra.mxu3 %vm112_vm3, %v1716_v28 }
0x11de   :  { %v1748_v4 = vpop.f32.mrf.mxu3 }
0x11df   :  { %v1749_v1 = vadd.f32 %v1911_v32, %v1748_v4 }
0x11e1   :  { %1754 = vst [vmem:[%s2981_s12] sm:$0xff] %v1749_v1 }
0x11f7   :  { %v1751_v35 = vpop.f32.mrf.mxu3 }
0x11f8   :  { %v1752_v34 = vadd.f32 %v1911_v32, %v1751_v35 }
0x11fa   :  { %1755 = vst [vmem:[%s2981_s12 + $0x8] sm:$0xff] %v1752_v34 }

</bundles_post_ra>
